<compile_context>
chip_gen: v7x
topology: tpu7x:2x2x1
jax: 0.10.0
libtpu: 0.0.40
codegen_flags: <defaults>
</compile_context>

<pallas_src>
import jax
import jax.numpy as jnp
from jax.experimental import pallas as pl
from jax.experimental.pallas import tpu as pltpu


def _round_up(x, m):
    return ((x + m - 1) // m) * m


# ---------------------------------------------------------------------------
# Fused path: in-kernel gather from VMEM-resident (embed-major) tables.
# ---------------------------------------------------------------------------
def _fused_score_kernel(idx_ref, ent_t_ref, path_t_ref, out_ref):
    # idx_ref    : (3, tb)        int32 rows = [path_idx, pos_ent_idx, neg_ent_idx]
    # ent_t_ref  : (E_pad, EV_pad) f32  entity table, embed-major, VMEM-resident
    # path_t_ref : (E_pad, PV_pad) f32  path   table, embed-major, VMEM-resident
    # out_ref    : (2, tb)        f32  rows = [pos_score, neg_score] (lane-dense)
    ent_t = ent_t_ref[...]
    path_t = path_t_ref[...]
    tb = out_ref.shape[1]

    def gather_cols(tab_t, idx_row):
        # tab_t: (E_pad, V_pad), idx_row: (1, tb)  ->  (E_pad, tb)
        vocab = tab_t.shape[1]
        onehot = (jax.lax.broadcasted_iota(jnp.int32, (vocab, tb), 0)
                  == idx_row).astype(jnp.float32)
        # One-hot row select via the MXU; HIGHEST keeps full f32 accuracy.
        return jnp.dot(tab_t, onehot,
                       preferred_element_type=jnp.float32,
                       precision=jax.lax.Precision.HIGHEST)

    path_vecs = gather_cols(path_t, idx_ref[0:1, :])   # (E_pad, tb)
    pos_vecs = gather_cols(ent_t, idx_ref[1:2, :])     # (E_pad, tb)
    neg_vecs = gather_cols(ent_t, idx_ref[2:3, :])     # (E_pad, tb)

    # Batched dot product == elementwise mul + reduce over the embed (sublane)
    # axis; the result is already a lane-dense (1, tb) row.
    out_ref[0:1, :] = jnp.sum(pos_vecs * path_vecs, axis=0, keepdims=True)
    out_ref[1:2, :] = jnp.sum(neg_vecs * path_vecs, axis=0, keepdims=True)


def _fused_forward(idxs, ent_emb, path_emb, tb):
    B = idxs.shape[0]
    ent_size, E = ent_emb.shape
    path_size, _ = path_emb.shape

    B_pad = _round_up(B, tb)
    E_pad = _round_up(E, 8)            # sublane axis of the embed-major tables
    ev_pad = _round_up(ent_size, 128)  # lane axis (vocab) of the tables
    pv_pad = _round_up(path_size, 128)

    # Embed-major (transposed), zero-padded tables. Zero pads contribute 0 to
    # every dot product, so they never change the result.
    ent_t = jnp.pad(ent_emb, ((0, ev_pad - ent_size), (0, E_pad - E))).T
    path_t = jnp.pad(path_emb, ((0, pv_pad - path_size), (0, E_pad - E))).T

    # Indices as (3, B_pad) int32 (long axis last). Pad rows use index 0
    # (always valid) and are sliced away below.
    idx_t = jnp.pad(idxs.astype(jnp.int32), ((0, B_pad - B), (0, 0))).T

    scores = pl.pallas_call(
        _fused_score_kernel,
        out_shape=jax.ShapeDtypeStruct((2, B_pad), jnp.float32),
        grid_spec=pltpu.PrefetchScalarGridSpec(
            num_scalar_prefetch=0,
            grid=(B_pad // tb,),
            in_specs=[
                pl.BlockSpec((3, tb), lambda i: (0, i)),
                pl.BlockSpec((E_pad, ev_pad), lambda i: (0, 0)),
                pl.BlockSpec((E_pad, pv_pad), lambda i: (0, 0)),
            ],
            out_specs=pl.BlockSpec((2, tb), lambda i: (0, i)),
        ),
        compiler_params=pltpu.CompilerParams(
            dimension_semantics=("parallel",),
            vmem_limit_bytes=32 * 1024 * 1024,
        ),
    )(idx_t, ent_t, path_t)

    pos_score = scores[0, :B].reshape(B, 1)
    neg_score = scores[1, :B].reshape(B, 1)
    return pos_score, neg_score


# ---------------------------------------------------------------------------
# Fallback path for vocabularies too large for VMEM-resident tables.
# ---------------------------------------------------------------------------
def _pregathered_score_kernel(pos_ref, neg_ref, path_ref, out_ref):
    # pos/neg/path : (tb, E_pad) f32 ; out : (tb, 2) f32 packed [pos, neg]
    path = path_ref[...]
    out_ref[:, 0:1] = jnp.sum(pos_ref[...] * path, axis=-1, keepdims=True)
    out_ref[:, 1:2] = jnp.sum(neg_ref[...] * path, axis=-1, keepdims=True)


def _pregathered_forward(idxs, ent_emb, path_emb, tb):
    # TODO(synk): for huge vocabularies a scalar-prefetch / manual-DMA row
    # gather inside the kernel would also remove this HBM round trip; here we
    # fall back to XLA's gather and only fuse the batched dot product.
    B = idxs.shape[0]
    E = ent_emb.shape[1]
    B_pad = _round_up(B, tb)
    E_pad = _round_up(E, 128)   # lane-dense embed axis

    idxs = idxs.astype(jnp.int32)
    path_vecs = jnp.take(path_emb, idxs[:, 0], axis=0)
    pos_vecs = jnp.take(ent_emb, idxs[:, 1], axis=0)
    neg_vecs = jnp.take(ent_emb, idxs[:, 2], axis=0)

    def pad2(x):
        return jnp.pad(x, ((0, B_pad - B), (0, E_pad - E)))

    vec_spec = pl.BlockSpec((tb, E_pad), lambda i: (i, 0))
    scores = pl.pallas_call(
        _pregathered_score_kernel,
        out_shape=jax.ShapeDtypeStruct((B_pad, 2), jnp.float32),
        grid_spec=pltpu.PrefetchScalarGridSpec(
            num_scalar_prefetch=0,
            grid=(B_pad // tb,),
            in_specs=[vec_spec, vec_spec, vec_spec],
            out_specs=pl.BlockSpec((tb, 2), lambda i: (i, 0)),
        ),
        compiler_params=pltpu.CompilerParams(
            dimension_semantics=("parallel",),
            vmem_limit_bytes=32 * 1024 * 1024,
        ),
    )(pad2(pos_vecs), pad2(neg_vecs), pad2(path_vecs))

    return scores[:B, 0:1], scores[:B, 1:2]


def word2vec_forward(ents_path_idxs, ent_emb, path_emb, *, tb=None,
                     fused_vmem_budget_bytes=16 * 1024 * 1024):
    """Word2Vec forward: returns (pos_score, neg_score), each (B, 1) float32."""
    B = ents_path_idxs.shape[0]
    ent_size, E = ent_emb.shape
    path_size = path_emb.shape[0]

    if tb is None:
        # Multiple of 128 (lane-dense packed score output), large enough to
        # amortize the ~0.35us per-grid-step overhead, capped so batches of
        # >= 256 rows keep >= 2 parallel grid steps (both v7x TensorCores).
        tb = max(128, min(512, _round_up(B, 128) // 2))
    tb = max(128, _round_up(tb, 128))

    # Rough VMEM working-set estimate of the fused (tables-resident) path:
    # padded tables + 3 one-hots + 3 gathered (E_pad, tb) slabs, all f32.
    E_pad = _round_up(E, 8)
    ev_pad = _round_up(ent_size, 128)
    pv_pad = _round_up(path_size, 128)
    fused_bytes = 4 * (E_pad * (ev_pad + pv_pad)
                       + tb * (2 * ev_pad + pv_pad)
                       + 3 * E_pad * tb)
    if fused_bytes <= fused_vmem_budget_bytes:
        return _fused_forward(ents_path_idxs, ent_emb, path_emb, tb)
    return _pregathered_forward(ents_path_idxs, ent_emb, path_emb, tb)


if __name__ == "__main__":
    # Small, deterministic setup consistent with the module.
    ent_size, path_size, embed_size = 16, 10, 32
    batch = 256   # -> tb=128, 2 parallel grid steps

    key = jax.random.PRNGKey(0)
    k_ent, k_path, k_idx = jax.random.split(key, 3)

    # nn.Embedding weights initialised ~ N(0, 0.1) as in __init__.
    ent_emb = 0.1 * jax.random.normal(k_ent, (ent_size, embed_size), jnp.float32)
    path_emb = 0.1 * jax.random.normal(k_path, (path_size, embed_size), jnp.float32)

    # (B, 3) index matrix: col 0 path idx, cols 1/2 entity idxs.
    path_idx = jax.random.randint(k_idx, (batch, 1), 0, path_size)
    ent_idx = jax.random.randint(jax.random.fold_in(k_idx, 1), (batch, 2), 0, ent_size)
    ents_path_idxs = jnp.concatenate([path_idx, ent_idx], axis=1).astype(jnp.int32)

    # Reference (pure JAX, mirrors the torch.bmm path).
    pv = jnp.take(ent_emb, ents_path_idxs[:, 1], axis=0)
    nv = jnp.take(ent_emb, ents_path_idxs[:, 2], axis=0)
    pa = jnp.take(path_emb, ents_path_idxs[:, 0], axis=0)
    ref_pos = jnp.sum(pv * pa, axis=-1, keepdims=True)
    ref_neg = jnp.sum(nv * pa, axis=-1, keepdims=True)

    # Fused path (tables VMEM-resident, in-kernel gather).
    pos_score, neg_score = word2vec_forward(ents_path_idxs, ent_emb, path_emb)
    pos_score = jax.block_until_ready(pos_score)
    neg_score = jax.block_until_ready(neg_score)
    assert pos_score.shape == (batch, 1) and neg_score.shape == (batch, 1)
    # 1e-3 tolerance is a safety net for MXU f32 pass rounding; with
    # Precision.HIGHEST the observed error is ~1e-7.
    assert jnp.allclose(pos_score, ref_pos, atol=1e-3)
    assert jnp.allclose(neg_score, ref_neg, atol=1e-3)

    # Large-vocab fallback path (forced by a zero fused budget).
    pos2, neg2 = word2vec_forward(ents_path_idxs, ent_emb, path_emb,
                                  fused_vmem_budget_bytes=0)
    pos2 = jax.block_until_ready(pos2)
    neg2 = jax.block_until_ready(neg2)
    assert jnp.allclose(pos2, ref_pos, atol=1e-5)
    assert jnp.allclose(neg2, ref_neg, atol=1e-5)

    print("KERNEL_OK")
</pallas_src>

<mosaic_0001>
module attributes {stable_mosaic.version = 11 : i64} {
  func.func @_fused_score_kernel(%arg0: i32, %arg1: memref<3x128xi32, #tpu.memory_space<vmem>>, %arg2: memref<32x128xf32, #tpu.memory_space<vmem>>, %arg3: memref<32x128xf32, #tpu.memory_space<vmem>>, %arg4: memref<2x128xf32, #tpu.memory_space<vmem>>) attributes {dimension_semantics = [#tpu.dimension_semantics<parallel>], iteration_bounds = array<i64: 2>, scalar_prefetch = 0 : i64, scratch_operands = 0 : i64, tpu.core_type = #tpu.core_type<tc>, window_params = [{transform_indices = @transform_0, window_bounds = array<i64: 3, 128>}, {pipeline_mode = #tpu.pipeline_mode<synchronous>, transform_indices = @transform_1, window_bounds = array<i64: 32, 128>}, {pipeline_mode = #tpu.pipeline_mode<synchronous>, transform_indices = @transform_2, window_bounds = array<i64: 32, 128>}, {transform_indices = @transform_3, window_bounds = array<i64: 2, 128>}]} {
    %c0 = arith.constant 0 : index
    %c0_0 = arith.constant 0 : index
    %0 = vector.load %arg2[%c0, %c0_0] : memref<32x128xf32, #tpu.memory_space<vmem>>, vector<32x128xf32>
    %c0_1 = arith.constant 0 : index
    %c0_2 = arith.constant 0 : index
    %1 = vector.load %arg3[%c0_1, %c0_2] : memref<32x128xf32, #tpu.memory_space<vmem>>, vector<32x128xf32>
    %c0_3 = arith.constant 0 : index
    %c0_4 = arith.constant 0 : index
    %2 = vector.load %arg1[%c0_3, %c0_4] : memref<3x128xi32, #tpu.memory_space<vmem>>, vector<1x128xi32>
    %3 = tpu.iota {dimensions = array<i32: 0>} : vector<128x128xi32>
    %4 = vector.broadcast %2 : vector<1x128xi32> to vector<128x128xi32>
    %5 = arith.cmpi eq, %3, %4 : vector<128x128xi32>
    %6 = arith.extui %5 : vector<128x128xi1> to vector<128x128xi32>
    %7 = arith.sitofp %6 : vector<128x128xi32> to vector<128x128xf32>
    %cst = arith.constant dense<0.000000e+00> : vector<32x128xf32>
    %8 = tpu.matmul %1, %7, %cst {dimension_numbers = #tpu.dot_dimension_numbers<[1], [0], [0], [1], [0, 0, 1, 1], [], []>, precision = #tpu.contract_precision<fp32>} : vector<32x128xf32>, vector<128x128xf32>, vector<32x128xf32> -> vector<32x128xf32>
    %c1 = arith.constant 1 : index
    %c0_5 = arith.constant 0 : index
    %9 = vector.load %arg1[%c1, %c0_5] : memref<3x128xi32, #tpu.memory_space<vmem>>, vector<1x128xi32>
    %10 = tpu.iota {dimensions = array<i32: 0>} : vector<128x128xi32>
    %11 = vector.broadcast %9 : vector<1x128xi32> to vector<128x128xi32>
    %12 = arith.cmpi eq, %10, %11 : vector<128x128xi32>
    %13 = arith.extui %12 : vector<128x128xi1> to vector<128x128xi32>
    %14 = arith.sitofp %13 : vector<128x128xi32> to vector<128x128xf32>
    %cst_6 = arith.constant dense<0.000000e+00> : vector<32x128xf32>
    %15 = tpu.matmul %0, %14, %cst_6 {dimension_numbers = #tpu.dot_dimension_numbers<[1], [0], [0], [1], [0, 0, 1, 1], [], []>, precision = #tpu.contract_precision<fp32>} : vector<32x128xf32>, vector<128x128xf32>, vector<32x128xf32> -> vector<32x128xf32>
    %c2 = arith.constant 2 : index
    %c0_7 = arith.constant 0 : index
    %16 = vector.load %arg1[%c2, %c0_7] : memref<3x128xi32, #tpu.memory_space<vmem>>, vector<1x128xi32>
    %17 = tpu.iota {dimensions = array<i32: 0>} : vector<128x128xi32>
    %18 = vector.broadcast %16 : vector<1x128xi32> to vector<128x128xi32>
    %19 = arith.cmpi eq, %17, %18 : vector<128x128xi32>
    %20 = arith.extui %19 : vector<128x128xi1> to vector<128x128xi32>
    %21 = arith.sitofp %20 : vector<128x128xi32> to vector<128x128xf32>
    %cst_8 = arith.constant dense<0.000000e+00> : vector<32x128xf32>
    %22 = tpu.matmul %0, %21, %cst_8 {dimension_numbers = #tpu.dot_dimension_numbers<[1], [0], [0], [1], [0, 0, 1, 1], [], []>, precision = #tpu.contract_precision<fp32>} : vector<32x128xf32>, vector<128x128xf32>, vector<32x128xf32> -> vector<32x128xf32>
    %23 = arith.mulf %15, %8 : vector<32x128xf32>
    %cst_9 = arith.constant dense<0.000000e+00> : vector<128xf32>
    %24 = vector.multi_reduction <add>, %23, %cst_9 [0] : vector<32x128xf32> to vector<128xf32>
    %25 = vector.shape_cast %24 : vector<128xf32> to vector<1x128xf32>
    %c0_10 = arith.constant 0 : index
    %c0_11 = arith.constant 0 : index
    %26 = vector.load %arg4[%c0_10, %c0_11] : memref<2x128xf32, #tpu.memory_space<vmem>>, vector<1x128xf32>
    tpu.vector_store %arg4[%c0_10, %c0_11], %25 {strides = array<i32>} : memref<2x128xf32, #tpu.memory_space<vmem>>, vector<1x128xf32>,
    %27 = arith.mulf %22, %8 : vector<32x128xf32>
    %cst_12 = arith.constant dense<0.000000e+00> : vector<128xf32>
    %28 = vector.multi_reduction <add>, %27, %cst_12 [0] : vector<32x128xf32> to vector<128xf32>
    %29 = vector.shape_cast %28 : vector<128xf32> to vector<1x128xf32>
    %c1_13 = arith.constant 1 : index
    %c0_14 = arith.constant 0 : index
    %30 = vector.load %arg4[%c1_13, %c0_14] : memref<2x128xf32, #tpu.memory_space<vmem>>, vector<1x128xf32>
    tpu.vector_store %arg4[%c1_13, %c0_14], %29 {strides = array<i32>} : memref<2x128xf32, #tpu.memory_space<vmem>>, vector<1x128xf32>,
    return
  }
  func.func @transform_0(%arg0: i32) -> (i32, i32) {
    %c0_i32 = arith.constant 0 : i32
    %c0_i32_0 = arith.constant 0 : i32
    return %c0_i32, %arg0 : i32, i32
  }
  func.func @transform_1(%arg0: i32) -> (i32, i32) {
    %c0_i32 = arith.constant 0 : i32
    %c0_i32_0 = arith.constant 0 : i32
    %c0_i32_1 = arith.constant 0 : i32
    return %c0_i32, %c0_i32_0 : i32, i32
  }
  func.func @transform_2(%arg0: i32) -> (i32, i32) {
    %c0_i32 = arith.constant 0 : i32
    %c0_i32_0 = arith.constant 0 : i32
    %c0_i32_1 = arith.constant 0 : i32
    return %c0_i32, %c0_i32_0 : i32, i32
  }
  func.func @transform_3(%arg0: i32) -> (i32, i32) {
    %c0_i32 = arith.constant 0 : i32
    %c0_i32_0 = arith.constant 0 : i32
    return %c0_i32, %arg0 : i32, i32
  }
}

</mosaic_0001>

<bundles_post_ra>
// kernel: tpu_custom_call.1
= control target key start
LH: loop header
LB: loop body
LE: loop exit
PB: predicated region body
PF: predicated region fallthrough
CT: control target
= control target key end

     0   :  { %8 = vsyncpa [#allocation3], 0  ;;  %s6807_s0 = inlined_call_operand.hbm [shape: s32[3,256], index: 0, kind: input, shape index: {}]   ;;  %s6808_s1 = inlined_call_operand.hbm [shape: f32[32,128], index: 1, kind: input, shape index: {}]   ;;  %s6809_s2 = inlined_call_operand.hbm [shape: f32[32,128], index: 2, kind: input, shape index: {}]   ;;  %s6810_s3 = inlined_call_operand.hbm [shape: f32[2,256], index: 3, kind: output, shape index: {}]  }
   0x1   :  { %10 = vsyncpa [#allocation3 + $0x1], 0 }
   0x2   :  { %11 = vsyncpa [#allocation6], 0 }
   0x3   :  { %12 = vsyncpa [#allocation4], 0 }
   0x4   :  { %14 = vsyncpa [#allocation4 + $0x1], 0  ;;  %s4988_s12 = smov 0   ;;  %s4990_s13 = smov 0  }
   0x5   :  { %s4992_s14 = smov 0   ;;  %s4994_s15 = smov 0  }
   0x6 LB: > { %s5009_s16 = sadd.s32 4294967295, %s4958_s15   ;;  %s2840_s17 = sadd.s32 4294967294, %s4958_s15   ;;  %s4958_s15 = sphi %s4994_s15, %s7179_s15   ;;  %s4954_s14 = sphi %s4992_s14, %s7178_s14   ;;  %s4950_s13 = sphi %s4990_s13, %s7177_s13   ;;  %s4946_s12 = sphi %s4988_s12, %s7176_s12  }
   0x7   : > { %p40_p0 = scmp.ne.s32.totalorder %s4950_s13, %s4946_s12  ;;  %p6811_p1 = scmp.eq.s32.totalorder %s5009_s16, 0 }
   0x8   : > { %p112_p3 = scmp.eq.s32.totalorder %s2840_s17, 1  ;;  %p2841_p5 = scmp.ge.s32.totalorder %s4958_s15, 1 }
   0x9   : > { %p5018_p4 = por %p6811_p1, %p40_p0  ;;  %p119_p7 = scmp.lt.s32.totalorder %s4958_s15, 3 }
   0xa   : > { %p5023_p6 = por %p112_p3, %p40_p0  ;;  %s4960_s21 = smov [#allocation5]  }
   0xb   : > { %s6946_s18 = scalar_select %p5018_p4, 1, 0 }
   0xc   : > { %s6947_s19 = scalar_select %p5023_p6, 1, 0 }
   0xd   : > { %p5028_p8 = pnand %p2841_p5, %p119_p7  ;;  %s131_s22 = sshll.u32 %s4960_s21, 4  ;;  %s5032_s22 = int_to_ptr.vmem [resolvable:$true] %s131_s22 }
   0xe   : > { %s4961_s24 = smov [#allocation7]   ;;  %s4802_s28 = scalar_lea.hbm %s6808_s1, 512 }
   0xf   : > { %p4743_p9 = pneg %p5028_p8  ;;  %s144_s25 = sshll.u32 %s4961_s24, 4  ;;  %s5043_s25 = int_to_ptr.vmem [resolvable:$true] %s144_s25 }
  0x10   : > { %p4803_p12 = scmp.ne.s32.totalorder %s6808_s1, %s4802_s28  ;;  %p4809_p5 = scmp.lt.u32.totalorder %s4802_s28, %s6808_s1 }
  0x11   : > { %p5039_p11 = pnand %p4743_p9, %p6811_p1 }
  0x13   : > { %p4804_p13 = pneg %p5039_p11 }
  0x15   : > { %p4805_p0 = pnand %p4804_p13, %p4803_p12 }
  0x17   : > { %p4806_p3 = pneg %p4805_p0 }
  0x19   : > { %p4811_p7 = pnand %p4809_p5, %p4806_p3 }
  0x1b   : > { %4814 = shalt.err (!%p4811_p7)
}
  0x1c   : > { %s4815_s6 = scalar_lea.vmem %s5032_s22, 512  ;;  %p4823_p2 = scmp.lt.s32.totalorder %s5032_s22, %s5032_s22 }
  0x1d   : > { %p4816_p9 = scmp.ne.s32.totalorder %s5032_s22, %s4815_s6  ;;  %p4824_p12 = scmp.lt.s32.totalorder %s4815_s6, %s4815_s6 }
  0x1f   : > { %p4818_p10 = pnand %p4816_p9, %p4804_p13  ;;  %p4825_p0 = por %p4824_p12, %p4823_p2 }
  0x21   : > { %p4819_p1 = pneg %p4818_p10 }
  0x23   : > { %p4826_p6 = pnand %p4825_p0, %p4819_p1 }
  0x25   : > { %4829 = shalt.err (!%p4826_p6)
}
  0x26   : > { %s4962_s7 = smov 128   ;;  %s4963_s8 = smov 8  }
  0x27   : > { %4746 = dma.hbm_to_vmem [thread:$0]  (!%p5039_p11), %s6808_s1, 512, %s5032_s22, [#allocation6], %s4962_s7, %s4962_s7, %s4963_s8  }
  0x28   : > { %s4830_s21 = scalar_lea.hbm %s6809_s2, 512 }
  0x29   : > { %p4831_p2 = scmp.ne.s32.totalorder %s6809_s2, %s4830_s21  ;;  %p4837_p10 = scmp.lt.u32.totalorder %s4830_s21, %s6809_s2 }
  0x2b   : > { %p4833_p1 = pnand %p4831_p2, %p4804_p13 }
  0x2d   : > { %p4834_p6 = pneg %p4833_p1 }
  0x2f   : > { %p4839_p3 = pnand %p4837_p10, %p4834_p6 }
  0x31   : > { %4842 = shalt.err (!%p4839_p3)
}
  0x32   : > { %s4843_s22 = scalar_lea.vmem %s5043_s25, 512  ;;  %p4851_p12 = scmp.lt.s32.totalorder %s5043_s25, %s5043_s25 }
  0x33   : > { %p4844_p5 = scmp.ne.s32.totalorder %s5043_s25, %s4843_s22  ;;  %p4852_p0 = scmp.lt.s32.totalorder %s4843_s22, %s4843_s22 }
  0x35   : > { %p4846_p7 = pnand %p4844_p5, %p4804_p13  ;;  %p4853_p2 = por %p4852_p0, %p4851_p12 }
  0x37   : > { %p4847_p9 = pneg %p4846_p7 }
  0x39   : > { %p4854_p1 = pnand %p4853_p2, %p4847_p9 }
  0x3b   : > { %4857 = shalt.err (!%p4854_p1)
}
  0x3c   : > { %4749 = dma.hbm_to_vmem [thread:$0]  (!%p5039_p11), %s6809_s2, 512, %s5043_s25, [#allocation6], %s4962_s7, %s4962_s7, %s4963_s8  }
  0x3d   : > { %s5098_s4 = sadd.s32 1, %s4958_s15   ;;  %s27_s23 = sadd.s32 1, %s4954_s14 }
  0x3e   : > { %s24_s5 = ssub.s32 %s4958_s15, %s5098_s4  ;;  %p34_p13 = scmp.ne.s32.totalorder %s4954_s14, %s4950_s13 }
  0x3f   : > { %p25_p6 = scmp.eq.s32.totalorder %s24_s5, 0  ;;  %p35_p10 = scmp.eq.s32.totalorder %s4958_s15, 0 }
  0x40   : > { %p6950_p3 = scmp.eq.s32.totalorder %s5009_s16, 1  ;;  %p4760_p7 = scmp.lt.s32.totalorder %s4958_s15, 2 }
  0x41   : > { %s5114_s9 = scalar_select %p25_p6, %s4954_s14, %s27_s23  }
  0x42   : > { %p5108_p5 = por %p6950_p3, %p34_p13  ;;  %p36_p9 = por %p35_p10, %p34_p13 }
  0x43   : > { %s158_s10 = sand.u32 1, %s4954_s14   ;;  %s2846_s25 = sshll.u32 %s4958_s15, 6 }
  0x44   : > { %s6951_s6 = scalar_select %p5108_p5, 1, 0 }
  0x45   : > { %s2845_s11 = sshll.u32 %s158_s10, 2  ;;  %s5121_s17 = scalar_lea.hbm %s6807_s0, %s2846_s25 }
  0x46   : > { %s162_s21 = scalar_lea.vmem [#allocation2], %s2845_s11  ;;  %p5125_p11 = pnand %p4760_p7, %p36_p9 }
  0x47   : > { %s169_s24 = sshll.u32 %s162_s21, 4  ;;  %s159_s27 = scalar_lea.sflag [#allocation3], %s158_s10  ;;  %s5123_s24 = int_to_ptr.vmem [resolvable:$true] %s169_s24 }
  0x48   : > { %s4858_s28 = scalar_lea.hbm %s5121_s17, 64  ;;  %p4860_p0 = pneg %p5125_p11 }
  0x49   : > { %p4859_p12 = scmp.ne.s32.totalorder %s5121_s17, %s4858_s28  ;;  %s4863_s30 = scalar_lea.hbm %s6807_s0, 128 }
  0x4a   : > { %p4864_p13 = scmp.lt.u32.totalorder %s5121_s17, %s6807_s0  ;;  %p4865_p6 = scmp.lt.u32.totalorder %s4863_s30, %s4858_s28 }
  0x4b   : > { %p4861_p2 = pnand %p4860_p0, %p4859_p12  ;;  %p4867_p3 = scmp.lt.u32.totalorder %s4858_s28, %s5121_s17 }
  0x4c   : > { %p4866_p10 = por %p4865_p6, %p4864_p13 }
  0x4d   : > { %p4862_p1 = pneg %p4861_p2 }
  0x4e   : > { %p4868_p7 = por %p4867_p3, %p4866_p10 }
  0x50   : > { %p4869_p9 = pnand %p4868_p7, %p4862_p1 }
  0x52   : > { %4872 = shalt.err (!%p4869_p9)
}
  0x53   : > { %s4873_s10 = scalar_lea.vmem %s5123_s24, 64  ;;  %s4964_s11 = smov [#allocation2]  }
  0x54   : > { %p4874_p12 = scmp.ne.s32.totalorder %s5123_s24, %s4873_s10  ;;  %s4878_s25 = sshll.u32 %s4964_s11, 4  ;;  %s4879_s25 = int_to_ptr.vmem [resolvable:$false] %s4878_s25 }
  0x55   : > { %s4880_s7 = scalar_lea.vmem %s4879_s25, 128  ;;  %p4881_p4 = scmp.lt.s32.totalorder %s5123_s24, %s4879_s25 }
  0x56   : > { %p4876_p2 = pnand %p4874_p12, %p4860_p0  ;;  %p4882_p13 = scmp.lt.s32.totalorder %s4880_s7, %s4873_s10 }
  0x58   : > { %p4877_p5 = pneg %p4876_p2  ;;  %p4883_p6 = por %p4882_p13, %p4881_p4 }
  0x5a   : > { %p4884_p10 = pnand %p4883_p6, %p4877_p5 }
  0x5c   : > { %4887 = shalt.err (!%p4884_p10)
}
  0x5d   : > { %4753 = dma.hbm_to_vmem [thread:$0]  (!%p5125_p11), %s5121_s17, 64, %s5123_s24, %s159_s27  }
  0x5e   : > { %178 = sbr.rel (%p5028_p8) target bundleno = 662 (0x296), region = 32 }
  0x65   : > { %s5157_s8 = sand.u32 1, %s4950_s13   ;;  %p6953_p4 = scmp.ne.s32.totalorder %s6946_s18, 0 }
  0x66   : > { %s2848_s21 = sshll.u32 %s5157_s8, 2  ;;  %s181_s28 = scalar_lea.sflag [#allocation3], %s5157_s8 }
  0x67   : > { %s5161_s22 = scalar_lea.vmem [#allocation2], %s2848_s21 }
  0x68   : > { %4933 = dma.done.wait (%p6953_p4), %s181_s28, 64  }
  0x69   : > { %4935 = vsyncadd (%p6953_p4), %s181_s28, 4294967232  ;;  %p6954_p5 = scmp.eq.s32.totalorder %s5009_s16, 0 }
  0x6b   : > { %4937 = dma.done.wait (%p6954_p5), [#allocation6], 1024   ;;  %p6955_p8 = pmov %p6954_p5 }
  0x6c   : > { %v224_v0 = vlaneseq  ;;  %v5183_v5 = vld [vmem:[%s5161_s22] ss:$0 sm:$0xff]  ;;  %v6814_v10 = vmov 0.0   ;;  %v6956_v13 = vmov 0  ;;  %v6817_v16 = vmov 1.0|1.0  }
  0x6d   : > { %4939 = vsyncadd (%p6955_p8), [#allocation6], 4294966272  ;;  %v6960_v17 = vmov 0  ;;  %v6969_v30 = vmov 0  ;;  %v219_v31 = vld [vmem:[#allocation7] sm:$0xff]  ;;  %v220_v32 = vld [vmem:[#allocation7 + $0x8] sm:$0xff] }
  0x6e   : > { %v5171_v1 = vshrl.u32 %v224_v0, 7  ;;  %v5331_v40 = vand.u32 4294901760, %v219_v31  ;;  %v5333_v41 = vand.u32 4294901760, %v220_v32  ;;  %v6973_v44 = vmov 0  ;;  %s2851_s18 = sshll.u32 %s5157_s8, 1  ;;  %s3048_s20 = sshll.u32 %s5009_s16, 5 }
  0x6f   : > { %v6977_v55 = vmov 0  ;;  %s214_s17 = scalar_lea.vmem [#allocation8], %s2851_s18  ;;  %s6763_s29 = scalar_lea.hbm %s6810_s3, %s3048_s20 }
  0x70   : > { %v5174_v2 = vadd.s32 8, %v5171_v1  ;;  %v5177_v3 = vadd.s32 16, %v5171_v1  ;;  %v5180_v4 = vadd.s32 24, %v5171_v1  ;;  %v5186_v6 = vadd.s32 32, %v5171_v1  ;;  %6972 = vst [vmem:[#allocation22_spill] sm:$0xff] %v5333_v41  ;;  %s2751_s24 = sshll.u32 %s214_s17, 4  ;;  %s6765_s24 = int_to_ptr.vmem [resolvable:$true] %s2751_s24 }
  0x71   : > { %v5189_v7 = vadd.s32 40, %v5171_v1  ;;  %v5192_v8 = vadd.s32 48, %v5171_v1  ;;  %v5195_v9 = vadd.s32 56, %v5171_v1  ;;  %vm245_vm0 = vcmp.eq.s32.totalorder %v5171_v1, %v5183_v5  ;;  %s2738_s30 = scalar_lea.sflag [#allocation4], %s5157_s8  ;;  %s4888_s16 = scalar_lea.vmem %s6765_s24, 32 }
  0x72   : > { %vm246_vm1 = vcmp.eq.s32.totalorder %v5174_v2, %v5183_v5  ;;  %vm247_vm2 = vcmp.eq.s32.totalorder %v5177_v3, %v5183_v5  ;;  %vm248_vm3 = vcmp.eq.s32.totalorder %v5180_v4, %v5183_v5  ;;  %v2853_v11 = vsel %vm245_vm0, 1.0, %v6814_v10  ;;  %p4889_p11 = scmp.ne.s32.totalorder %s6765_s24, %s4888_s16  ;;  %p7173_p0 = scmp.ne.s32.totalorder %s6951_s6, 0 }
  0x73   : > { %v2854_v12 = vsel %vm246_vm1, 1.0, %v6814_v10  ;;  %vm5207_vm4 = vmpackc.low %vm246_vm1, %vm245_vm0  ;;  %v5212_v14 = vadd.s32 64, %v5171_v1  ;;  %v5215_v15 = vadd.s32 72, %v5171_v1  ;;  %v5234_v18 = vadd.s32 80, %v5171_v1  ;;  %s4967_s23 = smov [#allocation8]  }
  0x74   : > { %v6957_v13 = vsel %vm5207_vm4, 4294967295, %v6956_v13  ;;  %4096 = vmatprep.subr.msk.bf16.mxu1 %vm5207_vm4, %v6817_v16  ;;  %4192 = vmatprep.subr.msk.bf16.mxu0 %vm5207_vm4, %v6817_v16  ;;  %vm5229_vm5 = vmpackc.low %vm248_vm3, %vm247_vm2  ;;  %v5237_v19 = vadd.s32 88, %v5171_v1  ;;  %v5240_v20 = vadd.s32 96, %v5171_v1  ;;  %v5243_v21 = vadd.s32 104, %v5171_v1  ;;  %p4890_p1 = pnand %p4889_p11, %p7173_p0  ;;  %s4892_s5 = sshll.u32 %s4967_s23, 4  ;;  %s4893_s5 = int_to_ptr.vmem [resolvable:$false] %s4892_s5 }
  0x75   : > { %6958 = vst [vmem:[#allocation12_spill] sm:$0xff] %v6957_v13  ;;  %6959 = vst [vmem:[#allocation13_spill] sm:$0xff] %v5215_v15  ;;  %v6961_v17 = vsel %vm5229_vm5, 4294967295, %v6960_v17  ;;  %4098 = vmatpush3.bf16.msk.msra.mxu1 %vm5207_vm4, %v6817_v16  ;;  %4194 = vmatpush3.bf16.msk.msra.mxu0 %vm5207_vm4, %v6817_v16  ;;  %vm249_vm6 = vcmp.eq.s32.totalorder %v5186_v6, %v5183_v5  ;;  %vm250_vm7 = vcmp.eq.s32.totalorder %v5189_v7, %v5183_v5  ;;  %s4894_s10 = scalar_lea.vmem %s4893_s5, 64  ;;  %p4895_p7 = scmp.lt.s32.totalorder %s6765_s24, %s4893_s5 }
  0x76   : > { %6962 = vst [vmem:[#allocation14_spill] sm:$0xff] %v6961_v17  ;;  %6963 = vst [vmem:[#allocation15_spill] sm:$0xff] %v5234_v18  ;;  %v5256_v22 = vadd.s32 112, %v5171_v1  ;;  %v5259_v23 = vadd.s32 120, %v5171_v1  ;;  %v5261_v24 = vsub.f32 %v2853_v11, %v2853_v11  ;;  %v5263_v25 = vsub.f32 %v2854_v12, %v2854_v12  ;;  %4100 = vmatprep.subr.msk.bf16.mxu1 %vm5229_vm5, %v6817_v16  ;;  %p4891_p3 = pneg %p4890_p1  ;;  %p4896_p9 = scmp.lt.s32.totalorder %s4894_s10, %s4888_s16 }
  0x77   : > { %6964 = vst [vmem:[#allocation16_spill] sm:$0xff] %v5237_v19  ;;  %6965 = vst [vmem:[#allocation17_spill] sm:$0xff] %v5240_v20  ;;  %v2855_v26 = vsel %vm247_vm2, 1.0, %v6814_v10  ;;  %v2856_v27 = vsel %vm248_vm3, 1.0, %v6814_v10  ;;  %4196 = vmatprep.subr.msk.bf16.mxu0 %vm5229_vm5, %v6817_v16  ;;  %v2857_v28 = vsel %vm249_vm6, 1.0, %v6814_v10  ;;  %v2858_v29 = vsel %vm250_vm7, 1.0, %v6814_v10 }
  0x78   : > { %6966 = vst [vmem:[#allocation18_spill] sm:$0xff] %v5243_v21  ;;  %6967 = vst [vmem:[#allocation19_spill] sm:$0xff] %v5256_v22  ;;  %vm251_vm9 = vcmp.eq.s32.totalorder %v5192_v8, %v5183_v5  ;;  %vm252_vm10 = vcmp.eq.s32.totalorder %v5195_v9, %v5183_v5  ;;  %vm253_vm11 = vcmp.eq.s32.totalorder %v5212_v14, %v5183_v5  ;;  %v417_v54 = vand.u32 4294901760, %v5261_v24  ;;  %p4897_p12 = por %p4896_p9, %p4895_p7 }
  0x79   : > { %6968 = vst [vmem:[#allocation20_spill] sm:$0xff] %v5259_v23  ;;  %vm5281_vm8 = vmpackc.low %vm250_vm7, %vm249_vm6  ;;  %v2859_v33 = vsel %vm251_vm9, 1.0, %v6814_v10  ;;  %v2860_v34 = vsel %vm252_vm10, 1.0, %v6814_v10  ;;  %vm254_vm12 = vcmp.eq.s32.totalorder %v5215_v15, %v5183_v5  ;;  %v5301_v35 = vsub.f32 %v2855_v26, %v2855_v26  ;;  %4102 = vmatpush3.bf16.msk.msra.mxu1 %vm5229_vm5, %v6817_v16  ;;  %4198 = vmatpush3.bf16.msk.msra.mxu0 %vm5229_vm5, %v6817_v16 }
  0x7a   : > { %v6970_v30 = vsel %vm5281_vm8, 4294967295, %v6969_v30  ;;  %v2861_v36 = vsel %vm253_vm11, 1.0, %v6814_v10  ;;  %v2862_v37 = vsel %vm254_vm12, 1.0, %v6814_v10  ;;  %vm255_vm13 = vcmp.eq.s32.totalorder %v5234_v18, %v5183_v5  ;;  %4104 = vmatprep.subr.msk.bf16.mxu1 %vm5281_vm8, %v6817_v16  ;;  %4200 = vmatprep.subr.msk.bf16.mxu0 %vm5281_vm8, %v6817_v16  ;;  %vm5345_vm14 = vmpackc.low %vm252_vm10, %vm251_vm9  ;;  %p4898_p2 = pnand %p4897_p12, %p4891_p3 }
  0x7b   : > { %6971 = vst [vmem:[#allocation21_spill] sm:$0xff] %v6970_v30  ;;  %v5319_v38 = vsub.f32 %v2856_v27, %v2856_v27  ;;  %v2863_v39 = vsel %vm255_vm13, 1.0, %v6814_v10  ;;  %v5335_v42 = vsub.f32 %v2857_v28, %v2857_v28  ;;  %v5337_v43 = vsub.f32 %v2858_v29, %v2858_v29  ;;  %vm5401_vm3 = vmpackc.low %vm254_vm12, %vm253_vm11 }
  0x7c   : > { %v6974_v44 = vsel %vm5345_vm14, 4294967295, %v6973_v44  ;;  %v5349_v45 = vsub.f32 %v2859_v33, %v2859_v33  ;;  %v5351_v46 = vsub.f32 %v2860_v34, %v2860_v34  ;;  %v5353_v47 = vsub.f32 %v2861_v36, %v2861_v36 }
  0x7d   : > { %6975 = vst [vmem:[#allocation23_spill] sm:$0xff] %v6974_v44  ;;  %v5355_v48 = vsub.f32 %v2862_v37, %v2862_v37  ;;  %vm256_vm15 = vcmp.eq.s32.totalorder %v5237_v19, %v5183_v5  ;;  %vm257_vm0 = vcmp.eq.s32.totalorder %v5240_v20, %v5183_v5  ;;  %4106 = vmatpush3.bf16.msk.msra.mxu1 %vm5281_vm8, %v6817_v16  ;;  %v6978_v55 = vsel %vm5401_vm3, 4294967295, %v6977_v55 }
  0x7e   : > { %4202 = vmatpush3.bf16.msk.msra.mxu0 %vm5281_vm8, %v6817_v16  ;;  %v2864_v49 = vsel %vm256_vm15, 1.0, %v6814_v10  ;;  %v5371_v50 = vsub.f32 %v2863_v39, %v2863_v39  ;;  %vm258_vm1 = vcmp.eq.s32.totalorder %v5243_v21, %v5183_v5  ;;  %v2865_v51 = vsel %vm257_vm0, 1.0, %v6814_v10  ;;  %4108 = vmatprep.subr.msk.bf16.mxu1 %vm5345_vm14, %v6817_v16  ;;  %6979 = vst [vmem:[#allocation25_spill] sm:$0xff] %v6978_v55  ;;  %vm5449_vm7 = vmpackc.low %vm256_vm15, %vm255_vm13 }
  0x7f   : > { %4204 = vmatprep.subr.msk.bf16.mxu0 %vm5345_vm14, %v6817_v16  ;;  %v2866_v52 = vsel %vm258_vm1, 1.0, %v6814_v10  ;;  %vm259_vm2 = vcmp.eq.s32.totalorder %v5256_v22, %v5183_v5  ;;  %v5392_v53 = vsub.f32 %v219_v31, %v5331_v40  ;;  %vm260_vm6 = vcmp.eq.s32.totalorder %v5259_v23, %v5183_v5  ;;  %vm5493_vm9 = vmpackc.low %vm258_vm1, %vm257_vm0 }
  0x80   : > { %v2867_v56 = vsel %vm259_vm2, 1.0, %v6814_v10  ;;  %v424_v57 = vand.u32 4294901760, %v5263_v25  ;;  %v5413_v58 = vsub.f32 %v220_v32, %v5333_v41  ;;  %v2868_v59 = vsel %vm260_vm6, 1.0, %v6814_v10  ;;  %vm5528_vm10 = vmpackc.low %vm260_vm6, %vm259_vm2 }
  0x81   : > { %6976 = vst [vmem:[#allocation24_spill] sm:$0xff] %v5392_v53  ;;  %v376_v60 = vand.u32 4294901760, %v5392_v53  ;;  %v431_v61 = vand.u32 4294901760, %v5301_v35  ;;  %v438_v62 = vand.u32 4294901760, %v5319_v38  ;;  %4110 = vmatpush3.bf16.msk.msra.mxu1 %vm5345_vm14, %v6817_v16  ;;  %v5428_v63 = vsub.f32 %v2864_v49, %v2864_v49 }
  0x82   : > { %4206 = vmatpush3.bf16.msk.msra.mxu0 %vm5345_vm14, %v6817_v16  ;;  %v418_v0 = vsub.f32 %v5261_v24, %v417_v54  ;;  %v425_v11 = vsub.f32 %v5263_v25, %v424_v57  ;;  %4112 = vmatprep.subr.msk.bf16.mxu1 %vm5401_vm3, %v6817_v16  ;;  %v5438_v12 = vsub.f32 %v2865_v51, %v2865_v51  ;;  %v6816_v27 = vand.u32 4294901760, %v5413_v58 }
  0x83   : > { %4208 = vmatprep.subr.msk.bf16.mxu0 %vm5401_vm3, %v6817_v16  ;;  %v377_v26 = vsub.f32 %v5392_v53, %v376_v60  ;;  %v445_v28 = vand.u32 4294901760, %v5335_v42  ;;  %v6980_v29 = vmov 0  ;;  %v5453_v31 = vsub.f32 %v2866_v52, %v2866_v52  ;;  %3557 = vmatprep.mubr.f32.mxu0 %v376_v60 }
  0x84   : > { %v6981_v29 = vsel %vm5449_vm7, 4294967295, %v6980_v29  ;;  %v5455_v32 = vsub.f32 %v2867_v56, %v2867_v56  ;;  %v5457_v33 = vsub.f32 %v2868_v59, %v2868_v59  ;;  %v452_v34 = vand.u32 4294901760, %v5337_v43 }
  0x85   : > { %6982 = vst [vmem:[#allocation26_spill] sm:$0xff] %v6981_v29  ;;  %v378_v36 = vand.u32 4294901760, %v377_v26  ;;  %v5460_v37 = vpack.c.bf16 %v424_v57, %v417_v54  ;;  %v432_v39 = vsub.f32 %v5301_v35, %v431_v61  ;;  %v439_v49 = vsub.f32 %v5319_v38, %v438_v62  ;;  %4114 = vmatpush3.bf16.msk.msra.mxu1 %vm5401_vm3, %v6817_v16 }
  0x86   : > { %6983 = vst [vmem:[#allocation27_spill] sm:$0xff] %v5455_v32  ;;  %4210 = vmatpush3.bf16.msk.msra.mxu0 %vm5401_vm3, %v6817_v16  ;;  %v419_v51 = vand.u32 4294901760, %v418_v0  ;;  %v426_v52 = vand.u32 4294901760, %v425_v11  ;;  %v5470_v56 = vpack.c.bf16 %v438_v62, %v431_v61  ;;  %v459_v59 = vand.u32 4294901760, %v5349_v45  ;;  %4116 = vmatprep.subr.msk.bf16.mxu1 %vm5449_vm7, %v6817_v16 }
  0x87   : > { %4212 = vmatprep.subr.msk.bf16.mxu0 %vm5449_vm7, %v6817_v16  ;;  %v5482_v54 = vsub.f32 %v5413_v58, %v6816_v27  ;;  %v446_v57 = vsub.f32 %v5335_v42, %v445_v28  ;;  %v466_v60 = vand.u32 4294901760, %v5351_v46  ;;  %v473_v61 = vand.u32 4294901760, %v5353_v47  ;;  %3443 = vmatprep.mubr.f32.mxu1 %v378_v36 }
  0x88   : > { %v6984_v62 = vmov 0  ;;  %v453_v0 = vsub.f32 %v5337_v43, %v452_v34  ;;  %v480_v11 = vand.u32 4294901760, %v5355_v48  ;;  %v487_v26 = vand.u32 4294901760, %v5371_v50 }
  0x89   : > { %v6985_v62 = vsel %vm5493_vm9, 4294967295, %v6984_v62  ;;  %v494_v10 = vand.u32 4294901760, %v5428_v63  ;;  %v433_v27 = vand.u32 4294901760, %v432_v39  ;;  %v440_v16 = vand.u32 4294901760, %v439_v49  ;;  %v221_v39 = vld [vmem:[#allocation7 + $0x10] sm:$0xff] }
  0x8a   : > { %6986 = vst [vmem:[#allocation28_spill] sm:$0xff] %v6985_v62  ;;  %v460_v55 = vsub.f32 %v5349_v45, %v459_v59  ;;  %v467_v44 = vsub.f32 %v5351_v46, %v466_v60  ;;  %v6987_v53 = vmov 1.0|1.0   ;;  %v474_v36 = vsub.f32 %v5353_v47, %v473_v61 }
  0x8b   : > { %4118 = vmatpush3.bf16.msk.msra.mxu1 %vm5449_vm7, %v6987_v53  ;;  %4214 = vmatpush3.bf16.msk.msra.mxu0 %vm5449_vm7, %v6987_v53  ;;  %v481_v30 = vsub.f32 %v5355_v48, %v480_v11  ;;  %v488_v17 = vsub.f32 %v5371_v50, %v487_v26  ;;  %v4127_v49 = vpack.c.bf16 %v426_v52, %v419_v51  ;;  %v388_v41 = vand.u32 4294901760, %v5482_v54 }
  0x8c   : > { %4120 = vmatprep.subr.msk.bf16.mxu1 %vm5493_vm9, %v6987_v53  ;;  %4216 = vmatprep.subr.msk.bf16.mxu0 %vm5493_vm9, %v6987_v53  ;;  %v5519_v29 = vpack.c.bf16 %v452_v34, %v445_v28  ;;  %v495_v13 = vsub.f32 %v5428_v63, %v494_v10  ;;  %v6988_v21 = vmov 0  ;;  %v447_v20 = vand.u32 4294901760, %v446_v57  ;;  %v222_v28 = vld [vmem:[#allocation7 + $0x18] sm:$0xff] }
  0x8d   : > { %v6989_v21 = vsel %vm5528_vm10, 4294967295, %v6988_v21  ;;  %v454_v19 = vand.u32 4294901760, %v453_v0  ;;  %v501_v51 = vand.u32 4294901760, %v5438_v12  ;;  %v508_v52 = vand.u32 4294901760, %v5453_v31 }
  0x8e   : > { %6990 = vst [vmem:[#allocation29_spill] sm:$0xff] %v6989_v21  ;;  %v5534_v34 = vpack.c.bf16 %v440_v16, %v433_v27  ;;  %v461_v54 = vand.u32 4294901760, %v460_v55  ;;  %v5536_v18 = vand.u32 4294901760, %v221_v39  ;;  %v515_v22 = vand.u32 4294901760, %v5455_v32 }
  0x8f   : > { %4122 = vmatpush3.bf16.msk.msra.mxu1 %vm5493_vm9, %v6987_v53  ;;  %4218 = vmatpush3.bf16.msk.msra.mxu0 %vm5493_vm9, %v6987_v53  ;;  %v468_v5 = vand.u32 4294901760, %v467_v44  ;;  %v475_v57 = vand.u32 4294901760, %v474_v36  ;;  %v482_v0 = vand.u32 4294901760, %v481_v30  ;;  %v489_v23 = vand.u32 4294901760, %v488_v17 }
  0x90   : > { %6991 = vst [vmem:[#allocation30_spill] sm:$0xff] %v5536_v18  ;;  %4124 = vmatprep.subr.msk.bf16.mxu1 %vm5528_vm10, %v6987_v53  ;;  %4220 = vmatprep.subr.msk.bf16.mxu0 %vm5528_vm10, %v6987_v53  ;;  %v496_v16 = vand.u32 4294901760, %v495_v13  ;;  %v5552_v55 = vsub.f32 %v221_v39, %v5536_v18  ;;  %v522_v27 = vand.u32 4294901760, %v5457_v33  ;;  %v5555_v62 = vand.u32 4294901760, %v222_v28 }
  0x91   : > { %v5557_v44 = vpack.c.bf16 %v454_v19, %v447_v20  ;;  %v5559_v17 = vpack.c.bf16 %v466_v60, %v459_v59  ;;  %v502_v30 = vsub.f32 %v5438_v12, %v501_v51  ;;  %v509_v36 = vsub.f32 %v5453_v31, %v508_v52  ;;  %v5583_v60 = vld [vmem:[%s5161_s22 + $0x1] ss:$0 sm:$0xff] }
  0x92   : > { %6992 = vst [vmem:[#allocation31_spill] sm:$0xff] %v5552_v55  ;;  %6993 = vst [vmem:[#allocation32_spill] sm:$0xff] %v5555_v62  ;;  %v5563_v15 = vpack.c.bf16 %v480_v11, %v473_v61  ;;  %v396_v13 = vand.u32 4294901760, %v5552_v55  ;;  %v516_v39 = vsub.f32 %v5455_v32, %v515_v22  ;;  %v5568_v18 = vsub.f32 %v222_v28, %v5555_v62  ;;  %v5592_v32 = vld [vmem:[%s5161_s22 + $0x2] ss:$0 sm:$0xff] }
  0x93   : > { %4126 = vmatpush3.bf16.msk.msra.mxu1 %vm5528_vm10, %v6987_v53  ;;  %4222 = vmatpush3.bf16.msk.msra.mxu0 %vm5528_vm10, %v6987_v53  ;;  %v5576_v19 = vpack.c.bf16 %v468_v5, %v461_v54  ;;  %v5578_v20 = vpack.c.bf16 %v482_v0, %v475_v57  ;;  %v5580_v59 = vpack.c.bf16 %v494_v10, %v487_v26  ;;  %v503_v54 = vand.u32 4294901760, %v502_v30 }
  0x94   : > { %6994 = vst [vmem:[#allocation33_spill] sm:$0xff] %v5568_v18  ;;  %4128 = vmatprep.subr.bf16.mxu1 %v4127_v49  ;;  %4224 = vmatprep.subr.bf16.mxu0 %v5460_v37  ;;  %v5586_v61 = vpack.c.bf16 %v496_v16, %v489_v23  ;;  %v397_v11 = vsub.f32 %v5552_v55, %v396_v13  ;;  %v406_v21 = vand.u32 4294901760, %v5568_v18  ;;  %v510_v5 = vand.u32 4294901760, %v509_v36 }
  0x95   : > { %v523_v28 = vsub.f32 %v5457_v33, %v522_v27  ;;  %v5594_v57 = vpack.c.bf16 %v508_v52, %v501_v51  ;;  %v5596_v10 = vpack.c.bf16 %v522_v27, %v515_v22  ;;  %v6995_v26 = vand.u32 4294901760, %v5413_v58 }
  0x96   : > { %3444 = vmatmul.mubr.f32.vlgmr.msra.gmra.mrb[0].mxu1 %v388_v41  ;;  %v398_v23 = vand.u32 4294901760, %v397_v11  ;;  %v517_v0 = vand.u32 4294901760, %v516_v39  ;;  %v407_v16 = vsub.f32 %v5568_v18, %v406_v21  ;;  %vm1068_vm11 = vcmp.eq.s32.totalorder %v5171_v1, %v5583_v60 }
  0x97   : > { %3558 = vmatmul.mubr.f32.vlgmr.msra.gmra.mrb[0].mxu0 %v6995_v26  ;;  %4130 = vmatpush3.bf16.msra.mxu1 %v4127_v49  ;;  %vm1069_vm12 = vcmp.eq.s32.totalorder %v5174_v2, %v5583_v60  ;;  %v6996_v51 = vmov 0.0   ;;  %vm1891_vm13 = vcmp.eq.s32.totalorder %v5171_v1, %v5592_v32  ;;  %vm1892_vm15 = vcmp.eq.s32.totalorder %v5174_v2, %v5592_v32  ;;  %v7019_v26 = vld [vmem:[#allocation13_spill] sm:$0xff] }
  0x98   : > { %4226 = vmatpush3.bf16.msra.mxu0 %v5460_v37  ;;  %v2918_v22 = vsel %vm1068_vm11, 1.0, %v6996_v51  ;;  %4132 = vmatprep.subr.bf16.mxu1 %v5534_v34  ;;  %v524_v41 = vand.u32 4294901760, %v523_v28  ;;  %v408_v52 = vand.u32 4294901760, %v407_v16  ;;  %v2919_v49 = vsel %vm1069_vm12, 1.0, %v6996_v51  ;;  %vm5614_vm0 = vmpackc.low %vm1069_vm12, %vm1068_vm11 }
  0x99   : > { %4228 = vmatprep.subr.bf16.mxu0 %v5470_v56  ;;  %v2983_v27 = vsel %vm1891_vm13, 1.0, %v6996_v51  ;;  %v5619_v30 = vpack.c.bf16 %v510_v5, %v503_v54  ;;  %3446 = vmatprep.mubr.f32.mxu1 %v398_v23  ;;  %v5623_v1 = vpack.c.bf16 %v5263_v25, %v5261_v24  ;;  %v2984_v2 = vsel %vm1892_vm15, 1.0, %v6996_v51  ;;  %vm5626_vm1 = vmpackc.low %vm1892_vm15, %vm1891_vm13 }
  0x9a   : > { %3560 = vmatprep.mubr.f32.mxu0 %v396_v13  ;;  %vm1070_vm2 = vcmp.eq.s32.totalorder %v5177_v3, %v5583_v60  ;;  %3447 = vmatmul.mubr.f32.gmra.mrb[2].mxu1 %v408_v52  ;;  %v5634_v39 = vpack.c.bf16 %v5319_v38, %v5301_v35  ;;  %vm1071_vm6 = vcmp.eq.s32.totalorder %v5180_v4, %v5583_v60  ;;  %v7001_v35 = vmov 0 }
  0x9b   : > { %3561 = vmatmul.mubr.f32.gmra.mrb[2].mxu0 %v406_v21  ;;  %v2920_v24 = vsel %vm1070_vm2, 1.0, %v6996_v51  ;;  %vm1893_vm11 = vcmp.eq.s32.totalorder %v5177_v3, %v5592_v32  ;;  %4134 = vmatpush3.bf16.msra.mxu1 %v5534_v34  ;;  %v5645_v25 = vpack.c.bf16 %v5337_v43, %v5335_v42  ;;  %v2921_v21 = vsel %vm1071_vm6, 1.0, %v6996_v51  ;;  %vm5648_vm12 = vmpackc.low %vm1071_vm6, %vm1070_vm2 }
  0x9c   : > { %4230 = vmatpush3.bf16.msra.mxu0 %v5470_v56  ;;  %v7002_v35 = vsel %vm5648_vm12, 4294967295, %v7001_v35  ;;  %vm1894_vm13 = vcmp.eq.s32.totalorder %v5180_v4, %v5592_v32  ;;  %v2985_v38 = vsel %vm1893_vm11, 1.0, %v6996_v51  ;;  %4136 = vmatprep.subr.bf16.mxu1 %v5557_v44  ;;  %v5657_v3 = vpack.c.bf16 %v524_v41, %v517_v0 }
  0x9d   : > { %7003 = vst [vmem:[#allocation34_spill] sm:$0xff] %v7002_v35  ;;  %4232 = vmatprep.subr.bf16.mxu0 %v5519_v29  ;;  %v5661_v42 = vpack.c.bf16 %v5351_v46, %v5349_v45  ;;  %v2986_v43 = vsel %vm1894_vm13, 1.0, %v6996_v51  ;;  %vm5664_vm15 = vmpackc.low %vm1894_vm13, %vm1893_vm11  ;;  %v7004_v56 = vmov 0  ;;  %vm1072_vm2 = vcmp.eq.s32.totalorder %v5186_v6, %v5583_v60  ;;  %3481 = vmatprep.mubr.f32.mxu1 %v5331_v40  ;;  %v7054_v35 = vld [vmem:[#allocation22_spill] sm:$0xff] }
  0x9e   : > { %v7005_v56 = vsel %vm5664_vm15, 4294967295, %v7004_v56  ;;  %3595 = vmatprep.mubr.f32.mxu0 %v5331_v40  ;;  %v5674_v4 = vpack.c.bf16 %v5355_v48, %v5353_v47  ;;  %vm1073_vm6 = vcmp.eq.s32.totalorder %v5189_v7, %v5583_v60  ;;  %v2922_v45 = vsel %vm1072_vm2, 1.0, %v6996_v51 }
  0x9f   : > { %7006 = vst [vmem:[#allocation35_spill] sm:$0xff] %v7005_v56  ;;  %vm1895_vm11 = vcmp.eq.s32.totalorder %v5186_v6, %v5592_v32  ;;  %v5683_v46 = vpack.c.bf16 %v5428_v63, %v5371_v50  ;;  %v2923_v34 = vsel %vm1073_vm6, 1.0, %v6996_v51  ;;  %vm5686_vm13 = vmpackc.low %vm1073_vm6, %vm1072_vm2  ;;  %v7007_v13 = vmov 0  ;;  %4138 = vmatpush3.bf16.msra.mxu1 %v5557_v44 }
  0xa0   : > { %v7008_v13 = vsel %vm5686_vm13, 4294967295, %v7007_v13  ;;  %vm1896_vm15 = vcmp.eq.s32.totalorder %v5189_v7, %v5592_v32  ;;  %v2987_v47 = vsel %vm1895_vm11, 1.0, %v6996_v51  ;;  %4234 = vmatpush3.bf16.msra.mxu0 %v5519_v29  ;;  %v5697_v6 = vpack.c.bf16 %v5453_v31, %v5438_v12  ;;  %4140 = vmatprep.subr.bf16.mxu1 %v5576_v19 }
  0xa1   : > { %7009 = vst [vmem:[#allocation36_spill] sm:$0xff] %v7008_v13  ;;  %v5699_v48 = vsub.f32 %v2918_v22, %v2918_v22  ;;  %v2988_v50 = vsel %vm1896_vm15, 1.0, %v6996_v51  ;;  %vm5702_vm2 = vmpackc.low %vm1896_vm15, %vm1895_vm11  ;;  %v7010_v63 = vmov 0  ;;  %vm1074_vm6 = vcmp.eq.s32.totalorder %v5192_v8, %v5583_v60  ;;  %4236 = vmatprep.subr.bf16.mxu0 %v5559_v17 }
  0xa2   : > { %v7011_v63 = vsel %vm5702_vm2, 4294967295, %v7010_v63  ;;  %v5710_v7 = vsub.f32 %v2919_v49, %v2919_v49  ;;  %vm1075_vm13 = vcmp.eq.s32.totalorder %v5195_v9, %v5583_v60  ;;  %v2924_v12 = vsel %vm1074_vm6, 1.0, %v6996_v51  ;;  %v7026_v49 = vld [vmem:[#allocation15_spill] sm:$0xff] }
  0xa3   : > { %7012 = vst [vmem:[#allocation37_spill] sm:$0xff] %v7011_v63  ;;  %vm1897_vm15 = vcmp.eq.s32.totalorder %v5192_v8, %v5592_v32  ;;  %v5717_v29 = vsub.f32 %v2983_v27, %v2983_v27  ;;  %v2925_v31 = vsel %vm1075_vm13, 1.0, %v6996_v51  ;;  %vm5720_vm11 = vmpackc.low %vm1075_vm13, %vm1074_vm6  ;;  %v7013_v44 = vmov 0  ;;  %4142 = vmatpush3.bf16.msra.mxu1 %v5576_v19 }
  0xa4   : > { %v7014_v44 = vsel %vm5720_vm11, 4294967295, %v7013_v44  ;;  %vm1898_vm2 = vcmp.eq.s32.totalorder %v5195_v9, %v5592_v32  ;;  %v2989_v11 = vsel %vm1897_vm15, 1.0, %v6996_v51  ;;  %v5727_v28 = vsub.f32 %v2984_v2, %v2984_v2  ;;  %4238 = vmatpush3.bf16.msra.mxu0 %v5559_v17  ;;  %4144 = vmatprep.subr.bf16.mxu1 %v5578_v20  ;;  %v7027_v2 = vld [vmem:[#allocation16_spill] sm:$0xff] }
  0xa5   : > { %7015 = vst [vmem:[#allocation38_spill] sm:$0xff] %v7014_v44  ;;  %v5729_v54 = vsub.f32 %v2920_v24, %v2920_v24  ;;  %v2990_v5 = vsel %vm1898_vm2, 1.0, %v6996_v51  ;;  %vm5732_vm12 = vmpackc.low %vm1898_vm2, %vm1897_vm15  ;;  %v7016_v8 = vmov 0  ;;  %vm1076_vm13 = vcmp.eq.s32.totalorder %v5212_v14, %v5583_v60  ;;  %4240 = vmatprep.subr.bf16.mxu0 %v5563_v15 }
  0xa6   : > { %v7017_v8 = vsel %vm5732_vm12, 4294967295, %v7016_v8  ;;  %v5740_v9 = vsub.f32 %v2921_v21, %v2921_v21  ;;  %vm1077_vm6 = vcmp.eq.s32.totalorder %v7019_v26, %v5583_v60  ;;  %v2926_v23 = vsel %vm1076_vm13, 1.0, %v6996_v51 }
  0xa7   : > { %7018 = vst [vmem:[#allocation39_spill] sm:$0xff] %v7017_v8  ;;  %vm1899_vm2 = vcmp.eq.s32.totalorder %v5212_v14, %v5592_v32  ;;  %v5749_v0 = vsub.f32 %v2985_v38, %v2985_v38  ;;  %v2927_v19 = vsel %vm1077_vm6, 1.0, %v6996_v51  ;;  %vm5752_vm15 = vmpackc.low %vm1077_vm6, %vm1076_vm13  ;;  %v7020_v17 = vmov 0  ;;  %4146 = vmatpush3.bf16.msra.mxu1 %v5578_v20 }
  0xa8   : > { %v7021_v17 = vsel %vm5752_vm15, 4294967295, %v7020_v17  ;;  %vm1900_vm12 = vcmp.eq.s32.totalorder %v7019_v26, %v5592_v32  ;;  %v2991_v16 = vsel %vm1899_vm2, 1.0, %v6996_v51  ;;  %v5759_v22 = vsub.f32 %v2986_v43, %v2986_v43  ;;  %4242 = vmatpush3.bf16.msra.mxu0 %v5563_v15  ;;  %4148 = vmatprep.subr.bf16.mxu1 %v5586_v61  ;;  %v7034_v26 = vld [vmem:[#allocation17_spill] sm:$0xff] }
  0xa9   : > { %7022 = vst [vmem:[#allocation13_spill] sm:$0xff] %v7021_v17  ;;  %v5761_v14 = vsub.f32 %v2922_v45, %v2922_v45  ;;  %v2992_v41 = vsel %vm1900_vm12, 1.0, %v6996_v51  ;;  %vm5764_vm11 = vmpackc.low %vm1900_vm12, %vm1899_vm2  ;;  %v7023_v52 = vmov 0  ;;  %vm1078_vm13 = vcmp.eq.s32.totalorder %v7026_v49, %v5583_v60  ;;  %4244 = vmatprep.subr.bf16.mxu0 %v5580_v59 }
  0xaa   : > { %v7024_v52 = vsel %vm5764_vm11, 4294967295, %v7023_v52  ;;  %v5770_v27 = vsub.f32 %v2923_v34, %v2923_v34  ;;  %vm1079_vm6 = vcmp.eq.s32.totalorder %v7027_v2, %v5583_v60  ;;  %v2928_v24 = vsel %vm1078_vm13, 1.0, %v6996_v51 }
  0xab   : > { %7025 = vst [vmem:[#allocation40_spill] sm:$0xff] %v7024_v52  ;;  %vm1901_vm15 = vcmp.eq.s32.totalorder %v7026_v49, %v5592_v32  ;;  %v5779_v21 = vsub.f32 %v2987_v47, %v2987_v47  ;;  %v2929_v38 = vsel %vm1079_vm6, 1.0, %v6996_v51  ;;  %vm5782_vm12 = vmpackc.low %vm1079_vm6, %vm1078_vm13  ;;  %v7028_v43 = vmov 0  ;;  %4150 = vmatpush3.bf16.msra.mxu1 %v5586_v61 }
  0xac   : > { %v7029_v43 = vsel %vm5782_vm12, 4294967295, %v7028_v43  ;;  %vm1902_vm2 = vcmp.eq.s32.totalorder %v7027_v2, %v5592_v32  ;;  %v2993_v45 = vsel %vm1901_vm15, 1.0, %v6996_v51  ;;  %v5791_v20 = vsub.f32 %v2988_v50, %v2988_v50  ;;  %v7035_v2 = vld [vmem:[#allocation18_spill] sm:$0xff]  ;;  %4246 = vmatpush3.bf16.msra.mxu0 %v5580_v59  ;;  %4152 = vmatprep.subr.bf16.mxu1 %v5619_v30  ;;  %v7043_v59 = vld [vmem:[#allocation20_spill] sm:$0xff] }
  0xad   : > { %7030 = vst [vmem:[#allocation15_spill] sm:$0xff] %v7029_v43  ;;  %v5793_v15 = vsub.f32 %v2924_v12, %v2924_v12  ;;  %v2994_v34 = vsel %vm1902_vm2, 1.0, %v6996_v51  ;;  %vm5796_vm11 = vmpackc.low %vm1902_vm2, %vm1901_vm15  ;;  %v7031_v47 = vmov 0  ;;  %vm1080_vm13 = vcmp.eq.s32.totalorder %v7034_v26, %v5583_v60  ;;  %4248 = vmatprep.subr.bf16.mxu0 %v5594_v57 }
  0xae   : > { %v7032_v47 = vsel %vm5796_vm11, 4294967295, %v7031_v47  ;;  %v5802_v49 = vsub.f32 %v2925_v31, %v2925_v31  ;;  %vm1081_vm6 = vcmp.eq.s32.totalorder %v7035_v2, %v5583_v60  ;;  %v2930_v43 = vsel %vm1080_vm13, 1.0, %v6996_v51 }
  0xaf   : > { %7033 = vst [vmem:[#allocation16_spill] sm:$0xff] %v7032_v47  ;;  %vm1903_vm12 = vcmp.eq.s32.totalorder %v7034_v26, %v5592_v32  ;;  %v5809_v50 = vsub.f32 %v2989_v11, %v2989_v11  ;;  %v2931_v12 = vsel %vm1081_vm6, 1.0, %v6996_v51  ;;  %vm5812_vm15 = vmpackc.low %vm1081_vm6, %vm1080_vm13  ;;  %v7036_v52 = vmov 0  ;;  %4154 = vmatpush3.bf16.msra.mxu1 %v5619_v30 }
  0xb0   : > { %v7037_v52 = vsel %vm5812_vm15, 4294967295, %v7036_v52  ;;  %vm1904_vm2 = vcmp.eq.s32.totalorder %v7035_v2, %v5592_v32  ;;  %v2995_v31 = vsel %vm1903_vm12, 1.0, %v6996_v51  ;;  %v5821_v47 = vsub.f32 %v2990_v5, %v2990_v5  ;;  %4250 = vmatpush3.bf16.msra.mxu0 %v5594_v57  ;;  %4156 = vmatprep.subr.bf16.mxu1 %v5657_v3 }
  0xb1   : > { %7038 = vst [vmem:[#allocation17_spill] sm:$0xff] %v7037_v52  ;;  %v5823_v26 = vsub.f32 %v2926_v23, %v2926_v23  ;;  %v2996_v11 = vsel %vm1904_vm2, 1.0, %v6996_v51  ;;  %vm5826_vm11 = vmpackc.low %vm1904_vm2, %vm1903_vm12  ;;  %v7039_v17 = vmov 0  ;;  %v7042_v52 = vld [vmem:[#allocation19_spill] sm:$0xff]  ;;  %v5834_v61 = vsub.f32 %v2927_v19, %v2927_v19  ;;  %4252 = vmatprep.subr.bf16.mxu0 %v5596_v10 }
  0xb2   : > { %v7040_v17 = vsel %vm5826_vm11, 4294967295, %v7039_v17  ;;  %vm1082_vm13 = vcmp.eq.s32.totalorder %v7042_v52, %v5583_v60  ;;  %vm1083_vm6 = vcmp.eq.s32.totalorder %v7043_v59, %v5583_v60  ;;  %vm1905_vm12 = vcmp.eq.s32.totalorder %v7042_v52, %v5592_v32 }
  0xb3   : > { %7041 = vst [vmem:[#allocation18_spill] sm:$0xff] %v7040_v17  ;;  %v2932_v5 = vsel %vm1082_vm13, 1.0, %v6996_v51  ;;  %v5841_v23 = vsub.f32 %v2991_v16, %v2991_v16  ;;  %v2933_v2 = vsel %vm1083_vm6, 1.0, %v6996_v51  ;;  %vm5844_vm2 = vmpackc.low %vm1083_vm6, %vm1082_vm13  ;;  %v7044_v17 = vmov 0  ;;  %4158 = vmatpush3.bf16.msra.mxu1 %v5657_v3 }
  0xb4   : > { %v7045_v17 = vsel %vm5844_vm2, 4294967295, %v7044_v17  ;;  %vm1906_vm11 = vcmp.eq.s32.totalorder %v7043_v59, %v5592_v32  ;;  %v2997_v19 = vsel %vm1905_vm12, 1.0, %v6996_v51  ;;  %v5851_v8 = vsub.f32 %v2992_v41, %v2992_v41  ;;  %4254 = vmatpush3.bf16.msra.mxu0 %v5596_v10  ;;  %4160 = vmatprep.subr.bf16.mxu1 %v5623_v1  ;;  %v5912_v10 = vld [vmem:[#allocation5] sm:$0xff] }
  0xb5   : > { %7046 = vst [vmem:[#allocation19_spill] sm:$0xff] %v7045_v17  ;;  %v5853_v60 = vsub.f32 %v2928_v24, %v2928_v24  ;;  %v5855_v44 = vsub.f32 %v2929_v38, %v2929_v38  ;;  %v5858_v16 = vsel %vm1906_vm11, 1.0, %v6996_v51  ;;  %vm5860_vm15 = vmpackc.low %vm1906_vm11, %vm1905_vm12  ;;  %v7047_v52 = vmov 0  ;;  %4256 = vmatprep.subr.msk.bf16.mxu0 %vm5207_vm4, %v6987_v53 }
  0xb6   : > { %v7048_v52 = vsel %vm5860_vm15, 4294967295, %v7047_v52  ;;  %v5866_v32 = vsub.f32 %v2993_v45, %v2993_v45  ;;  %v6889_v41 = vand.u32 4294901760, %v5699_v48  ;;  %v6892_v24 = vand.u32 4294901760, %v5710_v7  ;;  %3482 = vmatmul.mubr.f32.vlgmr.msra.gmra.mrb[0].mxu1 %v7054_v35 }
  0xb7   : > { %7049 = vst [vmem:[#allocation20_spill] sm:$0xff] %v7048_v52  ;;  %v5873_v51 = vsub.f32 %v2994_v34, %v2994_v34  ;;  %v5875_v59 = vsub.f32 %v2930_v43, %v2930_v43  ;;  %v6894_v30 = vand.u32 4294901760, %v5727_v28  ;;  %v7050_v52 = vand.u32 4294901760, %v5717_v29  ;;  %3596 = vmatmul.mubr.f32.vlgmr.msra.gmra.mrb[0].mxu0 %v7054_v35  ;;  %4162 = vmatpush3.bf16.msra.mxu1 %v5623_v1 }
  0xb8   : > { %v1241_v45 = vsub.f32 %v5699_v48, %v6889_v41  ;;  %v1248_v38 = vsub.f32 %v5710_v7, %v6892_v24  ;;  %v6897_v34 = vand.u32 4294901760, %v5740_v9  ;;  %v5889_v43 = vsub.f32 %v2931_v12, %v2931_v12  ;;  %4258 = vmatpush3.bf16.msk.msra.mxu0 %vm5207_vm4, %v6987_v53  ;;  %4164 = vmatprep.subr.bf16.mxu1 %v5634_v39 }
  0xb9   : > { %v2064_v17 = vsub.f32 %v5717_v29, %v7050_v52  ;;  %v5891_v63 = vsub.f32 %v2995_v31, %v2995_v31  ;;  %v2071_v57 = vsub.f32 %v5727_v28, %v6894_v30  ;;  %v7051_v41 = vand.u32 4294901760, %v5729_v54  ;;  %4260 = vmatprep.subr.msk.bf16.mxu0 %vm5229_vm5, %v6987_v53  ;;  %v7058_v31 = vld [vmem:[#allocation30_spill] sm:$0xff] }
  0xba   : > { %v1242_v24 = vand.u32 4294901760, %v1241_v45  ;;  %v1249_v52 = vand.u32 4294901760, %v1248_v38  ;;  %v1262_v12 = vsub.f32 %v5740_v9, %v6897_v34  ;;  %v5908_v30 = vsub.f32 %v2996_v11, %v2996_v11  ;;  %3484 = vmatprep.mubr.f32.mxu1 %v7058_v31  ;;  %3598 = vmatprep.mubr.f32.mxu0 %v7058_v31 }
  0xbb   : > { %v1255_v13 = vsub.f32 %v5729_v54, %v7051_v41  ;;  %v2065_v18 = vand.u32 4294901760, %v2064_v17  ;;  %v5910_v41 = vsub.f32 %v2932_v5, %v2932_v5  ;;  %v2072_v3 = vand.u32 4294901760, %v2071_v57  ;;  %3485 = vmatmul.mubr.f32.gmra.mrb[2].mxu1 %v5555_v62  ;;  %3599 = vmatmul.mubr.f32.gmra.mrb[2].mxu0 %v5555_v62 }
  0xbc   : > { %v5914_v38 = vpack.c.bf16 %v1249_v52, %v1242_v24  ;;  %v1263_v17 = vand.u32 4294901760, %v1262_v12  ;;  %v6902_v45 = vand.u32 4294901760, %v5749_v0  ;;  %v6901_v34 = vand.u32 4294901760, %v5759_v22  ;;  %4166 = vmatpush3.bf16.msra.mxu1 %v5634_v39  ;;  %4262 = vmatpush3.bf16.msk.msra.mxu0 %vm5229_vm5, %v6987_v53 }
  0xbd   : > { %v1256_v56 = vand.u32 4294901760, %v1255_v13  ;;  %v5920_v55 = vsub.f32 %v2933_v2, %v2933_v2  ;;  %v5922_v11 = vsub.f32 %v2997_v19, %v2997_v19  ;;  %v5924_v5 = vpack.c.bf16 %v2072_v3, %v2065_v18  ;;  %4168 = vmatprep.subr.bf16.mxu1 %v5645_v25  ;;  %4264 = vmatprep.subr.msk.bf16.mxu0 %vm5281_vm8, %v6987_v53 }
  0xbe   : > { %7053 = vst [vmem:[#allocation12_spill] sm:$0xff] %v5914_v38  ;;  %v6903_v13 = vand.u32 4294901760, %v5761_v14  ;;  %v2078_v57 = vsub.f32 %v5749_v0, %v6902_v45  ;;  %v2085_v2 = vsub.f32 %v5759_v22, %v6901_v34  ;;  %v6905_v18 = vand.u32 4294901760, %v5770_v27  ;;  %3633 = vmatprep.mubr.f32.mxu0 %v5331_v40 }
  0xbf   : > { %7055 = vst [vmem:[#allocation22_spill] sm:$0xff] %v5924_v5  ;;  %v5931_v24 = vpack.c.bf16 %v1263_v17, %v1256_v56  ;;  %v5945_v19 = vand.u32 4294901760, %v5912_v10  ;;  %v6907_v52 = vand.u32 4294901760, %v5779_v21  ;;  %v7063_v1 = vand.u32 4294901760, %v5802_v49 }
  0xc0   : > { %v1269_v56 = vsub.f32 %v5761_v14, %v6903_v13  ;;  %v2079_v3 = vand.u32 4294901760, %v2078_v57  ;;  %v2086_v17 = vand.u32 4294901760, %v2085_v2  ;;  %v1276_v34 = vsub.f32 %v5770_v27, %v6905_v18  ;;  %4170 = vmatpush3.bf16.msra.mxu1 %v5645_v25  ;;  %4266 = vmatpush3.bf16.msk.msra.mxu0 %vm5281_vm8, %v6987_v53 }
  0xc1   : > { %7056 = vst [vmem:[#allocation41_spill] sm:$0xff] %v5931_v24  ;;  %v2092_v12 = vsub.f32 %v5779_v21, %v6907_v52  ;;  %v7059_v24 = vand.u32 4294901760, %v5791_v20  ;;  %4172 = vmatprep.subr.bf16.mxu1 %v5661_v42  ;;  %4268 = vmatprep.subr.msk.bf16.mxu0 %vm5345_vm14, %v6987_v53 }
  0xc2   : > { %v1270_v13 = vand.u32 4294901760, %v1269_v56  ;;  %v5971_v18 = vpack.c.bf16 %v2086_v17, %v2079_v3  ;;  %v1277_v45 = vand.u32 4294901760, %v1276_v34  ;;  %v7061_v56 = vand.u32 4294901760, %v5793_v15  ;;  %v7064_v17 = vld [vmem:[#allocation24_spill] sm:$0xff] }
  0xc3   : > { %v2099_v57 = vsub.f32 %v5791_v20, %v7059_v24  ;;  %v2093_v39 = vand.u32 4294901760, %v2092_v12  ;;  %v1290_v3 = vsub.f32 %v5802_v49, %v7063_v1  ;;  %v6912_v34 = vand.u32 4294901760, %v5821_v47  ;;  %3519 = vmatprep.mubr.f32.mxu1 %v7064_v17 }
  0xc4   : > { %7060 = vst [vmem:[#allocation14_spill] sm:$0xff] %v5971_v18  ;;  %v1283_v5 = vsub.f32 %v5793_v15, %v7061_v56  ;;  %v5987_v56 = vpack.c.bf16 %v1277_v45, %v1270_v13  ;;  %v7065_v18 = vand.u32 4294901760, %v5809_v50  ;;  %v6911_v12 = vand.u32 4294901760, %v5823_v26  ;;  %4174 = vmatpush3.bf16.msra.mxu1 %v5661_v42  ;;  %4270 = vmatpush3.bf16.msk.msra.mxu0 %vm5345_vm14, %v6987_v53 }
  0xc5   : > { %v2100_v2 = vand.u32 4294901760, %v2099_v57  ;;  %v1291_v62 = vand.u32 4294901760, %v1290_v3  ;;  %v2113_v1 = vsub.f32 %v5821_v47, %v6912_v34  ;;  %v6913_v17 = vand.u32 4294901760, %v5834_v61  ;;  %4176 = vmatprep.subr.bf16.mxu1 %v5674_v4  ;;  %4272 = vmatprep.subr.msk.bf16.mxu0 %vm5401_vm3, %v6987_v53 }
  0xc6   : > { %v1284_v52 = vand.u32 4294901760, %v1283_v5  ;;  %v2106_v38 = vsub.f32 %v5809_v50, %v7065_v18  ;;  %v1297_v45 = vsub.f32 %v5823_v26, %v6911_v12  ;;  %v6914_v5 = vand.u32 4294901760, %v5841_v23 }
  0xc7   : > { %v5993_v57 = vpack.c.bf16 %v2100_v2, %v2093_v39  ;;  %v6917_v13 = vand.u32 4294901760, %v5851_v8  ;;  %v2114_v2 = vand.u32 4294901760, %v2113_v1  ;;  %v6915_v24 = vand.u32 4294901760, %v5853_v60 }
  0xc8   : > { %v2107_v40 = vand.u32 4294901760, %v2106_v38  ;;  %v6012_v25 = vpack.c.bf16 %v1291_v62, %v1284_v52  ;;  %v1304_v38 = vsub.f32 %v5834_v61, %v6913_v17  ;;  %v1298_v39 = vand.u32 4294901760, %v1297_v45  ;;  %4178 = vmatpush3.bf16.msra.mxu1 %v5674_v4  ;;  %4274 = vmatpush3.bf16.msk.msra.mxu0 %vm5401_vm3, %v6987_v53 }
  0xc9   : > { %v2120_v3 = vsub.f32 %v5841_v23, %v6914_v5  ;;  %v2127_v12 = vsub.f32 %v5851_v8, %v6917_v13  ;;  %v6916_v34 = vand.u32 4294901760, %v5855_v44  ;;  %v1311_v1 = vsub.f32 %v5853_v60, %v6915_v24  ;;  %4180 = vmatprep.subr.bf16.mxu1 %v5683_v46  ;;  %4276 = vmatprep.subr.msk.bf16.mxu0 %vm5449_vm7, %v6987_v53 }
  0xca   : > { %7067 = vst [vmem:[#allocation30_spill] sm:$0xff] %v6012_v25  ;;  %v6025_v62 = vpack.c.bf16 %v2114_v2, %v2107_v40  ;;  %v1305_v52 = vand.u32 4294901760, %v1304_v38  ;;  %v6923_v17 = vand.u32 4294901760, %v5866_v32  ;;  %v6922_v2 = vand.u32 4294901760, %v5873_v51 }
  0xcb   : > { %v2121_v45 = vand.u32 4294901760, %v2120_v3  ;;  %v2128_v5 = vand.u32 4294901760, %v2127_v12  ;;  %v1318_v40 = vsub.f32 %v5855_v44, %v6916_v34  ;;  %v1312_v42 = vand.u32 4294901760, %v1311_v1 }
  0xcc   : > { %7068 = vst [vmem:[#allocation21_spill] sm:$0xff] %v6025_v62  ;;  %v6043_v24 = vpack.c.bf16 %v1305_v52, %v1298_v39  ;;  %v2134_v18 = vsub.f32 %v5866_v32, %v6923_v17  ;;  %v6920_v12 = vand.u32 4294901760, %v5875_v59  ;;  %v2141_v13 = vsub.f32 %v5873_v51, %v6922_v2  ;;  %4182 = vmatpush3.bf16.msra.mxu1 %v5683_v46 }
  0xcd   : > { %v6049_v3 = vpack.c.bf16 %v2128_v5, %v2121_v45  ;;  %v1319_v34 = vand.u32 4294901760, %v1318_v40  ;;  %v6921_v62 = vand.u32 4294901760, %v5889_v43  ;;  %v6930_v52 = vand.u32 4294901760, %v5891_v63  ;;  %4278 = vmatpush3.bf16.msk.msra.mxu0 %vm5449_vm7, %v6987_v53  ;;  %4184 = vmatprep.subr.bf16.mxu1 %v5697_v6 }
  0xce   : > { %v2135_v25 = vand.u32 4294901760, %v2134_v18  ;;  %v1325_v39 = vsub.f32 %v5875_v59, %v6920_v12  ;;  %v6925_v1 = vand.u32 4294901760, %v5908_v30  ;;  %v6066_v5 = vsub.f32 %v5858_v16, %v5858_v16  ;;  %4280 = vmatprep.subr.msk.bf16.mxu0 %vm5493_vm9, %v6987_v53 }
  0xcf   : > { %v6068_v45 = vpack.c.bf16 %v1319_v34, %v1312_v42  ;;  %v2142_v40 = vand.u32 4294901760, %v2141_v13  ;;  %v1332_v18 = vsub.f32 %v5889_v43, %v6921_v62  ;;  %v2148_v38 = vsub.f32 %v5891_v63, %v6930_v52 }
  0xd0   : > { %v1326_v4 = vand.u32 4294901760, %v1325_v39  ;;  %v2155_v16 = vsub.f32 %v5908_v30, %v6925_v1  ;;  %v6927_v34 = vand.u32 4294901760, %v5910_v41  ;;  %v6926_v62 = vand.u32 4294901760, %v5920_v55  ;;  %v7072_v1 = vld [vmem:[#allocation27_spill] sm:$0xff]  ;;  %4186 = vmatpush3.bf16.msra.mxu1 %v5697_v6 }
  0xd1   : > { %7070 = vst [vmem:[#allocation24_spill] sm:$0xff] %v6068_v45  ;;  %v6084_v13 = vpack.c.bf16 %v2142_v40, %v2135_v25  ;;  %v1333_v42 = vand.u32 4294901760, %v1332_v18  ;;  %v2149_v2 = vand.u32 4294901760, %v2148_v38  ;;  %v6929_v45 = vand.u32 4294901760, %v5922_v11  ;;  %4282 = vmatpush3.bf16.msk.msra.mxu0 %vm5493_vm9, %v6987_v53 }
  0xd2   : > { %v2156_v17 = vand.u32 4294901760, %v2155_v16  ;;  %v1339_v39 = vsub.f32 %v5910_v41, %v6927_v34  ;;  %v4187_v25 = vpack.c.bf16 %v5457_v33, %v7072_v1  ;;  %v1346_v18 = vsub.f32 %v5920_v55, %v6926_v62  ;;  %4284 = vmatprep.subr.msk.bf16.mxu0 %vm5528_vm10, %v6987_v53 }
  0xd3   : > { %v6097_v40 = vpack.c.bf16 %v1333_v42, %v1326_v4  ;;  %v6928_v38 = vand.u32 4294901760, %v6066_v5  ;;  %v6109_v46 = vsub.f32 %v5912_v10, %v5945_v19  ;;  %v2162_v1 = vsub.f32 %v5922_v11, %v6929_v45 }
  0xd4   : > { %v6111_v12 = vpack.c.bf16 %v2156_v17, %v2149_v2  ;;  %v1340_v33 = vand.u32 4294901760, %v1339_v39  ;;  %v1347_v4 = vand.u32 4294901760, %v1346_v18  ;;  %v6121_v62 = vpack.c.bf16 %v5710_v7, %v5699_v48  ;;  %4188 = vmatprep.subr.bf16.mxu1 %v4187_v25 }
  0xd5   : > { %v2169_v42 = vsub.f32 %v6066_v5, %v6928_v38  ;;  %v2163_v34 = vand.u32 4294901760, %v2162_v1  ;;  %v6125_v10 = vpack.c.bf16 %v5727_v28, %v5717_v29  ;;  %v6129_v17 = vpack.c.bf16 %v5740_v9, %v5729_v54  ;;  %4190 = vmatpush3.bf16.msra.mxu1 %v4187_v25  ;;  %4286 = vmatpush3.bf16.msk.msra.mxu0 %vm5528_vm10, %v6987_v53 }
  0xd6   : > { %v6135_v2 = vpack.c.bf16 %v1347_v4, %v1340_v33  ;;  %v6139_v18 = vpack.c.bf16 %v5759_v22, %v5749_v0  ;;  %v6145_v38 = vand.u32 4294901760, %v6109_v46  ;;  %v6149_v6 = vpack.c.bf16 %v5770_v27, %v5761_v14  ;;  %4288 = vmatprep.subr.msk.bf16.mxu1 %vm5614_vm0, %v6987_v53  ;;  %4480 = vmatprep.subr.msk.bf16.mxu0 %vm5626_vm1, %v6987_v53 }
  0xd7   : > { %v2170_v39 = vand.u32 4294901760, %v2169_v42  ;;  %v6153_v16 = vpack.c.bf16 %v5791_v20, %v5779_v21  ;;  %v6157_v33 = vpack.c.bf16 %v5802_v49, %v5793_v15  ;;  %v6163_v42 = vpack.c.bf16 %v5821_v47, %v5809_v50 }
  0xd8   : > { %v6167_v45 = vpack.c.bf16 %v5834_v61, %v5823_v26  ;;  %v6171_v52 = vpack.c.bf16 %v5851_v8, %v5841_v23  ;;  %v7084_v25 = vand.u32 4294901760, %v5699_v48  ;;  %v7085_v1 = vand.u32 4294901760, %v5710_v7  ;;  %3520 = vmatmul.mubr.f32.vlgmr.msra.gmra.mrb[0].mxu1 %v5413_v58  ;;  %3634 = vmatmul.mubr.f32.vlgmr.msra.gmra.mrb[0].mxu0 %v7054_v35 }
  0xd9   : > { %7075 = vst [vmem:[#allocation23_spill] sm:$0xff] %v6153_v16  ;;  %v6159_v4 = vpack.c.bf16 %v2170_v39, %v2163_v34  ;;  %v6175_v16 = vpack.c.bf16 %v5855_v44, %v5853_v60  ;;  %v6179_v34 = vpack.c.bf16 %v5873_v51, %v5866_v32  ;;  %v6183_v39 = vpack.c.bf16 %v5889_v43, %v5875_v59 }
  0xda   : > { %7076 = vst [vmem:[#allocation25_spill] sm:$0xff] %v6167_v45  ;;  %7077 = vst [vmem:[#allocation26_spill] sm:$0xff] %v6171_v52  ;;  %v6190_v52 = vpack.c.bf16 %v5908_v30, %v5891_v63  ;;  %4290 = vmatpush3.bf16.msk.msra.mxu1 %vm5614_vm0, %v6987_v53  ;;  %4482 = vmatpush3.bf16.msk.msra.mxu0 %vm5626_vm1, %v6987_v53  ;;  %v7088_v48 = vand.u32 4294901760, %v5729_v54  ;;  %v7089_v7 = vand.u32 4294901760, %v5740_v9  ;;  %v7091_v58 = vand.u32 4294901760, %v5749_v0  ;;  %v7095_v54 = vld [vmem:[#allocation35_spill] sm:$0xff] }
  0xdb   : > { %7078 = vst [vmem:[#allocation27_spill] sm:$0xff] %v6175_v16  ;;  %7079 = vst [vmem:[#allocation28_spill] sm:$0xff] %v6179_v34  ;;  %v6194_v16 = vpack.c.bf16 %v5920_v55, %v5910_v41  ;;  %v6198_v34 = vpack.c.bf16 %v6066_v5, %v5922_v11  ;;  %3636 = vmatprep.mubr.f32.mxu0 %v7058_v31  ;;  %v7092_v35 = vand.u32 4294901760, %v5759_v22  ;;  %vm7096_vm5 = vnez %v7095_v54 }
  0xdc   : > { %7080 = vst [vmem:[#allocation29_spill] sm:$0xff] %v6183_v39  ;;  %7081 = vst [vmem:[#allocation42_spill] sm:$0xff] %v6190_v52  ;;  %v6210_v52 = vpack.c.bf16 %v7085_v1, %v7084_v25  ;;  %v7087_v39 = vand.u32 4294901760, %v5727_v28  ;;  %v7090_v28 = vld [vmem:[#allocation31_spill] sm:$0xff]  ;;  %4484 = vmatprep.subr.msk.bf16.mxu0 %vm7096_vm5, %v6987_v53  ;;  %v7097_v25 = vld [vmem:[#allocation33_spill] sm:$0xff]  ;;  %v7099_v0 = vand.u32 4294901760, %v5761_v14 }
  0xdd   : > { %7082 = vst [vmem:[#allocation43_spill] sm:$0xff] %v6194_v16  ;;  %7083 = vst [vmem:[#allocation44_spill] sm:$0xff] %v6198_v34  ;;  %v7086_v16 = vand.u32 4294901760, %v5717_v29  ;;  %v1200_v34 = vsub.f32 %v6109_v46, %v6145_v38  ;;  %v6232_v29 = vpack.c.bf16 %v7089_v7, %v7088_v48  ;;  %3522 = vmatprep.mubr.f32.mxu1 %v7090_v28  ;;  %v7098_v1 = vld [vmem:[#allocation32_spill] sm:$0xff]  ;;  %v7100_v22 = vand.u32 4294901760, %v5770_v27  ;;  %v7103_v48 = vld [vmem:[#allocation37_spill] sm:$0xff] }
  0xde   : > { %3523 = vmatmul.mubr.f32.gmra.mrb[2].mxu1 %v7097_v25  ;;  %3637 = vmatmul.mubr.f32.gmra.mrb[2].mxu0 %v7098_v1  ;;  %vm7104_vm14 = vnez %v7103_v48  ;;  %v7105_v7 = vand.u32 4294901760, %v5779_v21  ;;  %v7106_v28 = vand.u32 4294901760, %v5791_v20  ;;  %v216_v14 = vld [vmem:[#allocation5 + $0x8] sm:$0xff]  ;;  %v7107_v27 = vand.u32 4294901760, %v5793_v15  ;;  %v7109_v20 = vld [vmem:[#allocation38_spill] sm:$0xff] }
  0xdf   : > { %v6216_v45 = vpack.c.bf16 %v7087_v39, %v7086_v16  ;;  %v6240_v16 = vpack.c.bf16 %v7092_v35, %v7091_v58  ;;  %v7093_v39 = vld [vmem:[#allocation34_spill] sm:$0xff]  ;;  %v1201_v9 = vand.u32 4294901760, %v1200_v34  ;;  %4486 = vmatpush3.bf16.msk.msra.mxu0 %vm7096_vm5, %v6987_v53  ;;  %v6260_v31 = vpack.c.bf16 %v7100_v22, %v7099_v0  ;;  %v7101_v34 = vld [vmem:[#allocation36_spill] sm:$0xff] }
  0xe0   : > { %vm7094_vm4 = vnez %v7093_v39  ;;  %vm7102_vm8 = vnez %v7101_v34  ;;  %4488 = vmatprep.subr.msk.bf16.mxu0 %vm7104_vm14, %v6987_v53  ;;  %v6272_v58 = vpack.c.bf16 %v7106_v28, %v7105_v7  ;;  %v7108_v35 = vand.u32 4294901760, %v5802_v49  ;;  %v217_v15 = vld [vmem:[#allocation5 + $0x10] sm:$0xff]  ;;  %v218_v49 = vld [vmem:[#allocation5 + $0x18] sm:$0xff] }
  0xe1   : > { %4292 = vmatprep.subr.msk.bf16.mxu1 %vm7094_vm4, %v6987_v53  ;;  %3671 = vmatprep.mubr.f32.mxu1 %v1201_v9  ;;  %vm7110_vm3 = vnez %v7109_v20  ;;  %v7113_v25 = vand.u32 4294901760, %v5809_v50  ;;  %v7114_v1 = vand.u32 4294901760, %v5821_v47  ;;  %v6298_v22 = vand.u32 4294901760, %v216_v14  ;;  %v7118_v47 = vld [vmem:[#allocation13_spill] sm:$0xff] }
  0xe2   : > { %4294 = vmatpush3.bf16.msk.msra.mxu1 %vm7094_vm4, %v6987_v53  ;;  %3899 = vmatprep.mubr.f32.mxu0 %v1201_v9  ;;  %v6284_v21 = vpack.c.bf16 %v7108_v35, %v7107_v27  ;;  %v7111_v9 = vld [vmem:[#allocation39_spill] sm:$0xff]  ;;  %v7116_v7 = vand.u32 4294901760, %v5823_v26  ;;  %v7117_v50 = vand.u32 4294901760, %v5834_v61  ;;  %vm7119_vm9 = vnez %v7118_v47  ;;  %v7120_v27 = vld [vmem:[#allocation40_spill] sm:$0xff] }
  0xe3   : > { %4296 = vmatprep.subr.msk.bf16.mxu1 %vm7102_vm8, %v6987_v53  ;;  %4490 = vmatpush3.bf16.msk.msra.mxu0 %vm7104_vm14, %v6987_v53  ;;  %vm7112_vm7 = vnez %v7111_v9  ;;  %v6296_v0 = vpack.c.bf16 %v7114_v1, %v7113_v25  ;;  %vm7121_vm10 = vnez %v7120_v27  ;;  %v7122_v35 = vand.u32 4294901760, %v5841_v23 }
  0xe4   : > { %4492 = vmatprep.subr.msk.bf16.mxu0 %vm7112_vm7, %v6987_v53  ;;  %v6310_v28 = vpack.c.bf16 %v7117_v50, %v7116_v7  ;;  %v7123_v25 = vand.u32 4294901760, %v5851_v8  ;;  %v6327_v26 = vsub.f32 %v216_v14, %v6298_v22  ;;  %v6329_v61 = vand.u32 4294901760, %v218_v49  ;;  %v7128_v50 = vld [vmem:[#allocation15_spill] sm:$0xff]  ;;  %v7130_v14 = vld [vmem:[#allocation16_spill] sm:$0xff] }
  0xe5   : > { %7115 = vst [vmem:[#allocation31_spill] sm:$0xff] %v6296_v0  ;;  %v6324_v0 = vand.u32 4294901760, %v217_v15  ;;  %v7125_v23 = vand.u32 4294901760, %v5853_v60  ;;  %v7126_v8 = vand.u32 4294901760, %v5855_v44  ;;  %vm7129_vm11 = vnez %v7128_v50 }
  0xe6   : > { %4298 = vmatpush3.bf16.msk.msra.mxu1 %vm7102_vm8, %v6987_v53  ;;  %v6322_v1 = vpack.c.bf16 %v7123_v25, %v7122_v35  ;;  %vm7131_vm13 = vnez %v7130_v14  ;;  %v7132_v35 = vand.u32 4294901760, %v5866_v32  ;;  %v7133_v25 = vand.u32 4294901760, %v5873_v51 }
  0xe7   : > { %4300 = vmatprep.subr.msk.bf16.mxu1 %vm7110_vm3, %v6987_v53  ;;  %4494 = vmatpush3.bf16.msk.msra.mxu0 %vm7112_vm7, %v6987_v53  ;;  %v6341_v7 = vpack.c.bf16 %v7126_v8, %v7125_v23  ;;  %v6356_v60 = vsub.f32 %v217_v15, %v6324_v0  ;;  %v6359_v44 = vand.u32 4294901760, %v6327_v26  ;;  %v6362_v23 = vsub.f32 %v218_v49, %v6329_v61  ;;  %v7138_v8 = vld [vmem:[#allocation17_spill] sm:$0xff]  ;;  %v7140_v49 = vld [vmem:[#allocation18_spill] sm:$0xff] }
  0xe8   : > { %4496 = vmatprep.subr.msk.bf16.mxu0 %vm7121_vm10, %v6987_v53  ;;  %7124 = vst [vmem:[#allocation34_spill] sm:$0xff] %v6322_v1  ;;  %v6353_v1 = vpack.c.bf16 %v7133_v25, %v7132_v35  ;;  %v7135_v32 = vand.u32 4294901760, %v5875_v59  ;;  %v7136_v51 = vand.u32 4294901760, %v5889_v43  ;;  %vm7139_vm6 = vnez %v7138_v8 }
  0xe9   : > { %7127 = vst [vmem:[#allocation35_spill] sm:$0xff] %v6341_v7  ;;  %vm7141_vm12 = vnez %v7140_v49  ;;  %v7142_v35 = vand.u32 4294901760, %v5891_v63  ;;  %v7143_v25 = vand.u32 4294901760, %v5908_v30  ;;  %v6389_v59 = vand.u32 4294901760, %v6356_v60 }
  0xea   : > { %4302 = vmatpush3.bf16.msk.msra.mxu1 %vm7110_vm3, %v6987_v53  ;;  %7134 = vst [vmem:[#allocation33_spill] sm:$0xff] %v6353_v1  ;;  %v6374_v15 = vpack.c.bf16 %v7136_v51, %v7135_v32  ;;  %v1210_v43 = vsub.f32 %v6327_v26, %v6359_v44  ;;  %v6394_v32 = vand.u32 4294901760, %v6362_v23  ;;  %v7145_v63 = vand.u32 4294901760, %v5910_v41 }
  0xeb   : > { %4304 = vmatprep.subr.msk.bf16.mxu1 %vm7119_vm9, %v6987_v53  ;;  %4498 = vmatpush3.bf16.msk.msra.mxu0 %vm7121_vm10, %v6987_v53  ;;  %v6386_v1 = vpack.c.bf16 %v7143_v25, %v7142_v35  ;;  %v7146_v30 = vand.u32 4294901760, %v5920_v55  ;;  %v1220_v41 = vsub.f32 %v6356_v60, %v6389_v59 }
  0xec   : > { %4500 = vmatprep.subr.msk.bf16.mxu0 %vm7131_vm13, %v6987_v53  ;;  %7137 = vst [vmem:[#allocation32_spill] sm:$0xff] %v6374_v15  ;;  %v7150_v15 = vand.u32 4294901760, %v6066_v5  ;;  %v1211_v55 = vand.u32 4294901760, %v1210_v43  ;;  %v7152_v5 = vld [vmem:[#allocation22_spill] sm:$0xff]  ;;  %v7153_v43 = vld [vmem:[#allocation41_spill] sm:$0xff] }
  0xed   : > { %7144 = vst [vmem:[#allocation36_spill] sm:$0xff] %v6386_v1  ;;  %v6406_v51 = vpack.c.bf16 %v7146_v30, %v7145_v63  ;;  %v7149_v1 = vand.u32 4294901760, %v5922_v11  ;;  %v1230_v63 = vsub.f32 %v6362_v23, %v6394_v32  ;;  %v7151_v11 = vld [vmem:[#allocation12_spill] sm:$0xff]  ;;  %v7154_v30 = vld [vmem:[#allocation14_spill] sm:$0xff] }
  0xee   : > { %4306 = vmatpush3.bf16.msk.msra.mxu1 %vm7119_vm9, %v6987_v53 }
  0xef   : > { %4308 = vmatprep.subr.msk.bf16.mxu1 %vm7129_vm11, %v6987_v53  ;;  %4502 = vmatpush3.bf16.msk.msra.mxu0 %vm7131_vm13, %v6987_v53  ;;  %v6418_v7 = vpack.c.bf16 %v7150_v15, %v7149_v1  ;;  %v1221_v1 = vand.u32 4294901760, %v1220_v41  ;;  %v1231_v15 = vand.u32 4294901760, %v1230_v63  ;;  %v7155_v41 = vld [vmem:[#allocation30_spill] sm:$0xff]  ;;  %v7157_v63 = vld [vmem:[#allocation24_spill] sm:$0xff] }
  0xf0   : > { %4504 = vmatprep.subr.msk.bf16.mxu0 %vm7141_vm12, %v6987_v53 }
  0xf2   : > { %4310 = vmatpush3.bf16.msk.msra.mxu1 %vm7129_vm11, %v6987_v53 }
  0xf3   : > { %4312 = vmatprep.subr.msk.bf16.mxu1 %vm7139_vm6, %v6987_v53  ;;  %4506 = vmatpush3.bf16.msk.msra.mxu0 %vm7141_vm12, %v6987_v53 }
  0xf4   : > { %4508 = vmatprep.subr.msk.bf16.mxu0 %vm5860_vm15, %v6987_v53 }
  0xf6   : > { %4314 = vmatpush3.bf16.msk.msra.mxu1 %vm7139_vm6, %v6987_v53 }
  0xf7   : > { %4316 = vmatprep.subr.msk.bf16.mxu1 %vm5844_vm2, %v6987_v53  ;;  %4510 = vmatpush3.bf16.msk.msra.mxu0 %vm5860_vm15, %v6987_v53 }
  0xf8   : > { %4512 = vmatprep.subr.bf16.mxu0 %v7152_v5 }
  0xfa   : > { %4318 = vmatpush3.bf16.msk.msra.mxu1 %vm5844_vm2, %v6987_v53  ;;  %3900 = vmatmul.mubr.f32.vlgmr.msra.gmra.mrb[4].mxu0 %v1211_v55 }
  0xfb   : > { %4320 = vmatprep.subr.bf16.mxu1 %v7151_v11  ;;  %4514 = vmatpush3.bf16.msra.mxu0 %v7152_v5 }
  0xfc   : > { %4516 = vmatprep.subr.bf16.mxu0 %v7154_v30  ;;  %3902 = vmatprep.mubr.f32.mxu0 %v1221_v1 }
  0xfd   : > { %3672 = vmatmul.mubr.f32.vlgmr.msra.gmra.mrb[4].mxu1 %v1211_v55  ;;  %v7156_v55 = vld [vmem:[#allocation21_spill] sm:$0xff] }
  0xfe   : > { %4322 = vmatpush3.bf16.msra.mxu1 %v7151_v11  ;;  %3674 = vmatprep.mubr.f32.mxu1 %v1221_v1 }
  0xff   : > { %4324 = vmatprep.subr.bf16.mxu1 %v7153_v43  ;;  %3903 = vmatmul.mubr.f32.gmra.mrb[6].mxu0 %v1231_v15 }
 0x100   : > { %4518 = vmatpush3.bf16.msra.mxu0 %v7154_v30  ;;  %3937 = vmatprep.mubr.f32.mxu0 %v5945_v19 }
 0x101   : > { %3675 = vmatmul.mubr.f32.gmra.mrb[6].mxu1 %v1231_v15  ;;  %4520 = vmatprep.subr.bf16.mxu0 %v5993_v57 }
 0x102   : > { %4326 = vmatpush3.bf16.msra.mxu1 %v7153_v43  ;;  %3709 = vmatprep.mubr.f32.mxu1 %v5945_v19 }
 0x103   : > { %4328 = vmatprep.subr.bf16.mxu1 %v5987_v56 }
 0x104   : > { %4522 = vmatpush3.bf16.msra.mxu0 %v5993_v57  ;;  %v7159_v57 = vld [vmem:[#allocation25_spill] sm:$0xff] }
 0x105   : > { %4524 = vmatprep.subr.bf16.mxu0 %v7156_v55 }
 0x106   : > { %4330 = vmatpush3.bf16.msra.mxu1 %v5987_v56  ;;  %v7158_v56 = vld [vmem:[#allocation23_spill] sm:$0xff] }
 0x107   : > { %4332 = vmatprep.subr.bf16.mxu1 %v7155_v41 }
 0x108   : > { %4526 = vmatpush3.bf16.msra.mxu0 %v7156_v55 }
 0x109   : > { %4528 = vmatprep.subr.bf16.mxu0 %v6049_v3 }
 0x10a   : > { %4334 = vmatpush3.bf16.msra.mxu1 %v7155_v41 }
 0x10b   : > { %4336 = vmatprep.subr.bf16.mxu1 %v6043_v24 }
 0x10c   : > { %4530 = vmatpush3.bf16.msra.mxu0 %v6049_v3  ;;  %v7162_v3 = vld [vmem:[#allocation28_spill] sm:$0xff] }
 0x10d   : > { %4532 = vmatprep.subr.bf16.mxu0 %v6084_v13 }
 0x10e   : > { %4338 = vmatpush3.bf16.msra.mxu1 %v6043_v24  ;;  %v7160_v24 = vld [vmem:[#allocation26_spill] sm:$0xff] }
 0x10f   : > { %4340 = vmatprep.subr.bf16.mxu1 %v7157_v63 }
 0x110   : > { %4534 = vmatpush3.bf16.msra.mxu0 %v6084_v13  ;;  %v7163_v13 = vld [vmem:[#allocation29_spill] sm:$0xff] }
 0x111   : > { %4536 = vmatprep.subr.bf16.mxu0 %v6111_v12 }
 0x112   : > { %4342 = vmatpush3.bf16.msra.mxu1 %v7157_v63 }
 0x113   : > { %4344 = vmatprep.subr.bf16.mxu1 %v6097_v40 }
 0x114   : > { %4538 = vmatpush3.bf16.msra.mxu0 %v6111_v12  ;;  %v7166_v12 = vld [vmem:[#allocation44_spill] sm:$0xff] }
 0x115   : > { %4540 = vmatprep.subr.bf16.mxu0 %v6159_v4 }
 0x116   : > { %4346 = vmatpush3.bf16.msra.mxu1 %v6097_v40  ;;  %v7164_v40 = vld [vmem:[#allocation42_spill] sm:$0xff] }
 0x117   : > { %4348 = vmatprep.subr.bf16.mxu1 %v6135_v2 }
 0x118   : > { %4542 = vmatpush3.bf16.msra.mxu0 %v6159_v4 }
 0x119   : > { %4544 = vmatprep.subr.bf16.mxu0 %v6125_v10 }
 0x11a   : > { %4350 = vmatpush3.bf16.msra.mxu1 %v6135_v2  ;;  %v7172_v2 = vld [vmem:[#allocation36_spill] sm:$0xff] }
 0x11b   : > { %4352 = vmatprep.subr.bf16.mxu1 %v6121_v62  ;;  %3938 = vmatmul.mubr.f32.vlgmr.msra.gmra.mrb[4].mxu0 %v6298_v22 }
 0x11c   : > { %4546 = vmatpush3.bf16.msra.mxu0 %v6125_v10  ;;  %3940 = vmatprep.mubr.f32.mxu0 %v6324_v0  ;;  %v7170_v10 = vld [vmem:[#allocation33_spill] sm:$0xff] }
 0x11d   : > { %3710 = vmatmul.mubr.f32.vlgmr.msra.gmra.mrb[4].mxu1 %v6298_v22  ;;  %4548 = vmatprep.subr.bf16.mxu0 %v6139_v18 }
 0x11e   : > { %4354 = vmatpush3.bf16.msra.mxu1 %v6121_v62  ;;  %3712 = vmatprep.mubr.f32.mxu1 %v6324_v0  ;;  %v7161_v62 = vld [vmem:[#allocation27_spill] sm:$0xff] }
 0x11f   : > { %4356 = vmatprep.subr.bf16.mxu1 %v6129_v17  ;;  %3941 = vmatmul.mubr.f32.gmra.mrb[6].mxu0 %v6329_v61 }
 0x120   : > { %4550 = vmatpush3.bf16.msra.mxu0 %v6139_v18  ;;  %3975 = vmatprep.mubr.f32.mxu0 %v6109_v46 }
 0x121   : > { %3713 = vmatmul.mubr.f32.gmra.mrb[6].mxu1 %v6329_v61  ;;  %4552 = vmatprep.subr.bf16.mxu0 %v7158_v56 }
 0x122   : > { %4358 = vmatpush3.bf16.msra.mxu1 %v6129_v17  ;;  %3747 = vmatprep.mubr.f32.mxu1 %v6109_v46  ;;  %v7165_v46 = vld [vmem:[#allocation43_spill] sm:$0xff]  ;;  %v7171_v17 = vld [vmem:[#allocation32_spill] sm:$0xff] }
 0x123   : > { %4360 = vmatprep.subr.bf16.mxu1 %v6149_v6 }
 0x124   : > { %4554 = vmatpush3.bf16.msra.mxu0 %v7158_v56 }
 0x125   : > { %4556 = vmatprep.subr.bf16.mxu0 %v6163_v42 }
 0x126   : > { %4362 = vmatpush3.bf16.msra.mxu1 %v6149_v6 }
 0x127   : > { %4364 = vmatprep.subr.bf16.mxu1 %v6157_v33 }
 0x128   : > { %4558 = vmatpush3.bf16.msra.mxu0 %v6163_v42 }
 0x129   : > { %4560 = vmatprep.subr.bf16.mxu0 %v7160_v24 }
 0x12a   : > { %4366 = vmatpush3.bf16.msra.mxu1 %v6157_v33 }
 0x12b   : > { %4368 = vmatprep.subr.bf16.mxu1 %v7159_v57 }
 0x12c   : > { %4562 = vmatpush3.bf16.msra.mxu0 %v7160_v24 }
 0x12d   : > { %4564 = vmatprep.subr.bf16.mxu0 %v7162_v3 }
 0x12e   : > { %4370 = vmatpush3.bf16.msra.mxu1 %v7159_v57 }
 0x12f   : > { %4372 = vmatprep.subr.bf16.mxu1 %v7161_v62 }
 0x130   : > { %4566 = vmatpush3.bf16.msra.mxu0 %v7162_v3 }
 0x131   : > { %4568 = vmatprep.subr.bf16.mxu0 %v7164_v40 }
 0x132   : > { %4374 = vmatpush3.bf16.msra.mxu1 %v7161_v62 }
 0x133   : > { %4376 = vmatprep.subr.bf16.mxu1 %v7163_v13 }
 0x134   : > { %4570 = vmatpush3.bf16.msra.mxu0 %v7164_v40 }
 0x135   : > { %4572 = vmatprep.subr.bf16.mxu0 %v7166_v12 }
 0x136   : > { %4378 = vmatpush3.bf16.msra.mxu1 %v7163_v13 }
 0x137   : > { %4380 = vmatprep.subr.bf16.mxu1 %v7165_v46 }
 0x138   : > { %4574 = vmatpush3.bf16.msra.mxu0 %v7166_v12 }
 0x139   : > { %4576 = vmatprep.subr.msk.bf16.mxu0 %vm5626_vm1, %v6987_v53 }
 0x13a   : > { %4382 = vmatpush3.bf16.msra.mxu1 %v7165_v46 }
 0x13b   : > { %4384 = vmatprep.subr.msk.bf16.mxu1 %vm5614_vm0, %v6987_v53  ;;  %3976 = vmatmul.mubr.f32.vlgmr.msra.gmra.mrb[4].mxu0 %v6327_v26 }
 0x13c   : > { %4578 = vmatpush3.bf16.msk.msra.mxu0 %vm5626_vm1, %v6987_v53  ;;  %3978 = vmatprep.mubr.f32.mxu0 %v6356_v60 }
 0x13d   : > { %3748 = vmatmul.mubr.f32.vlgmr.msra.gmra.mrb[4].mxu1 %v6327_v26  ;;  %4580 = vmatprep.subr.msk.bf16.mxu0 %vm7096_vm5, %v6987_v53 }
 0x13e   : > { %4386 = vmatpush3.bf16.msk.msra.mxu1 %vm5614_vm0, %v6987_v53  ;;  %3750 = vmatprep.mubr.f32.mxu1 %v6356_v60 }
 0x13f   : > { %4388 = vmatprep.subr.msk.bf16.mxu1 %vm7094_vm4, %v6987_v53  ;;  %3979 = vmatmul.mubr.f32.gmra.mrb[6].mxu0 %v6362_v23 }
 0x140   : > { %4582 = vmatpush3.bf16.msk.msra.mxu0 %vm7096_vm5, %v6987_v53  ;;  %4013 = vmatprep.mubr.f32.mxu0 %v6145_v38 }
 0x141   : > { %3751 = vmatmul.mubr.f32.gmra.mrb[6].mxu1 %v6362_v23  ;;  %4584 = vmatprep.subr.msk.bf16.mxu0 %vm7104_vm14, %v6987_v53 }
 0x142   : > { %4390 = vmatpush3.bf16.msk.msra.mxu1 %vm7094_vm4, %v6987_v53  ;;  %3785 = vmatprep.mubr.f32.mxu1 %v6145_v38  ;;  %v7169_v38 = vld [vmem:[#allocation35_spill] sm:$0xff] }
 0x143   : > { %4392 = vmatprep.subr.msk.bf16.mxu1 %vm7102_vm8, %v6987_v53 }
 0x144   : > { %4586 = vmatpush3.bf16.msk.msra.mxu0 %vm7104_vm14, %v6987_v53 }
 0x145   : > { %4588 = vmatprep.subr.msk.bf16.mxu0 %vm7112_vm7, %v6987_v53 }
 0x146   : > { %4394 = vmatpush3.bf16.msk.msra.mxu1 %vm7102_vm8, %v6987_v53 }
 0x147   : > { %4396 = vmatprep.subr.msk.bf16.mxu1 %vm7110_vm3, %v6987_v53 }
 0x148   : > { %4590 = vmatpush3.bf16.msk.msra.mxu0 %vm7112_vm7, %v6987_v53 }
 0x149   : > { %4592 = vmatprep.subr.msk.bf16.mxu0 %vm7121_vm10, %v6987_v53 }
 0x14a   : > { %4398 = vmatpush3.bf16.msk.msra.mxu1 %vm7110_vm3, %v6987_v53 }
 0x14b   : > { %4400 = vmatprep.subr.msk.bf16.mxu1 %vm7119_vm9, %v6987_v53 }
 0x14c   : > { %4594 = vmatpush3.bf16.msk.msra.mxu0 %vm7121_vm10, %v6987_v53 }
 0x14d   : > { %4596 = vmatprep.subr.msk.bf16.mxu0 %vm7131_vm13, %v6987_v53 }
 0x14e   : > { %4402 = vmatpush3.bf16.msk.msra.mxu1 %vm7119_vm9, %v6987_v53 }
 0x14f   : > { %4404 = vmatprep.subr.msk.bf16.mxu1 %vm7129_vm11, %v6987_v53 }
 0x150   : > { %4598 = vmatpush3.bf16.msk.msra.mxu0 %vm7131_vm13, %v6987_v53 }
 0x151   : > { %4600 = vmatprep.subr.msk.bf16.mxu0 %vm7141_vm12, %v6987_v53 }
 0x152   : > { %4406 = vmatpush3.bf16.msk.msra.mxu1 %vm7129_vm11, %v6987_v53 }
 0x153   : > { %4408 = vmatprep.subr.msk.bf16.mxu1 %vm7139_vm6, %v6987_v53 }
 0x154   : > { %4602 = vmatpush3.bf16.msk.msra.mxu0 %vm7141_vm12, %v6987_v53 }
 0x155   : > { %4604 = vmatprep.subr.msk.bf16.mxu0 %vm5860_vm15, %v6987_v53 }
 0x156   : > { %4410 = vmatpush3.bf16.msk.msra.mxu1 %vm7139_vm6, %v6987_v53 }
 0x157   : > { %4412 = vmatprep.subr.msk.bf16.mxu1 %vm5844_vm2, %v6987_v53 }
 0x158   : > { %4606 = vmatpush3.bf16.msk.msra.mxu0 %vm5860_vm15, %v6987_v53 }
 0x159   : > { %4608 = vmatprep.subr.bf16.mxu0 %v6216_v45 }
 0x15a   : > { %4414 = vmatpush3.bf16.msk.msra.mxu1 %vm5844_vm2, %v6987_v53 }
 0x15b   : > { %4416 = vmatprep.subr.bf16.mxu1 %v6210_v52  ;;  %4014 = vmatmul.mubr.f32.vlgmr.msra.gmra.mrb[4].mxu0 %v6359_v44 }
 0x15c   : > { %4610 = vmatpush3.bf16.msra.mxu0 %v6216_v45  ;;  %4016 = vmatprep.mubr.f32.mxu0 %v6389_v59  ;;  %v7168_v45 = vld [vmem:[#allocation34_spill] sm:$0xff] }
 0x15d   : > { %3786 = vmatmul.mubr.f32.vlgmr.msra.gmra.mrb[4].mxu1 %v6359_v44  ;;  %4612 = vmatprep.subr.bf16.mxu0 %v6240_v16 }
 0x15e   : > { %4418 = vmatpush3.bf16.msra.mxu1 %v6210_v52  ;;  %3788 = vmatprep.mubr.f32.mxu1 %v6389_v59  ;;  %v7167_v52 = vld [vmem:[#allocation31_spill] sm:$0xff] }
 0x15f   : > { %4420 = vmatprep.subr.bf16.mxu1 %v6232_v29  ;;  %4017 = vmatmul.mubr.f32.gmra.mrb[6].mxu0 %v6394_v32 }
 0x160   : > { %4614 = vmatpush3.bf16.msra.mxu0 %v6240_v16  ;;  %4051 = vmatprep.mubr.f32.mxu0 %v5945_v19 }
 0x161   : > { %3789 = vmatmul.mubr.f32.gmra.mrb[6].mxu1 %v6394_v32  ;;  %4616 = vmatprep.subr.bf16.mxu0 %v6272_v58 }
 0x162   : > { %4422 = vmatpush3.bf16.msra.mxu1 %v6232_v29  ;;  %3823 = vmatprep.mubr.f32.mxu1 %v5945_v19 }
 0x163   : > { %4424 = vmatprep.subr.bf16.mxu1 %v6260_v31 }
 0x164   : > { %4618 = vmatpush3.bf16.msra.mxu0 %v6272_v58 }
 0x165   : > { %4620 = vmatprep.subr.bf16.mxu0 %v7167_v52 }
 0x166   : > { %4426 = vmatpush3.bf16.msra.mxu1 %v6260_v31 }
 0x167   : > { %4428 = vmatprep.subr.bf16.mxu1 %v6284_v21 }
 0x168   : > { %4622 = vmatpush3.bf16.msra.mxu0 %v7167_v52 }
 0x169   : > { %4624 = vmatprep.subr.bf16.mxu0 %v7168_v45 }
 0x16a   : > { %4430 = vmatpush3.bf16.msra.mxu1 %v6284_v21 }
 0x16b   : > { %4432 = vmatprep.subr.bf16.mxu1 %v6310_v28 }
 0x16c   : > { %4626 = vmatpush3.bf16.msra.mxu0 %v7168_v45 }
 0x16d   : > { %4628 = vmatprep.subr.bf16.mxu0 %v7170_v10 }
 0x16e   : > { %4434 = vmatpush3.bf16.msra.mxu1 %v6310_v28 }
 0x16f   : > { %4436 = vmatprep.subr.bf16.mxu1 %v7169_v38 }
 0x170   : > { %4630 = vmatpush3.bf16.msra.mxu0 %v7170_v10 }
 0x171   : > { %4632 = vmatprep.subr.bf16.mxu0 %v7172_v2 }
 0x172   : > { %4438 = vmatpush3.bf16.msra.mxu1 %v7169_v38 }
 0x173   : > { %4440 = vmatprep.subr.bf16.mxu1 %v7171_v17 }
 0x174   : > { %4634 = vmatpush3.bf16.msra.mxu0 %v7172_v2 }
 0x175   : > { %4636 = vmatprep.subr.bf16.mxu0 %v6418_v7 }
 0x176   : > { %4442 = vmatpush3.bf16.msra.mxu1 %v7171_v17 }
 0x177   : > { %4444 = vmatprep.subr.bf16.mxu1 %v6406_v51 }
 0x178   : > { %4638 = vmatpush3.bf16.msra.mxu0 %v6418_v7 }
 0x179   : > { %4640 = vmatprep.subr.msk.bf16.mxu0 %vm5626_vm1, %v6987_v53 }
 0x17a   : > { %4446 = vmatpush3.bf16.msra.mxu1 %v6406_v51 }
 0x17b   : > { %4448 = vmatprep.subr.msk.bf16.mxu1 %vm5614_vm0, %v6987_v53  ;;  %4052 = vmatmul.mubr.f32.vlgmr.msra.gmra.mrb[4].mxu0 %v6298_v22 }
 0x17c   : > { %4642 = vmatpush3.bf16.msk.msra.mxu0 %vm5626_vm1, %v6987_v53  ;;  %4054 = vmatprep.mubr.f32.mxu0 %v6324_v0 }
 0x17d   : > { %3824 = vmatmul.mubr.f32.vlgmr.msra.gmra.mrb[4].mxu1 %v6298_v22  ;;  %4644 = vmatprep.subr.msk.bf16.mxu0 %vm7096_vm5, %v6987_v53 }
 0x17e   : > { %4450 = vmatpush3.bf16.msk.msra.mxu1 %vm5614_vm0, %v6987_v53  ;;  %3826 = vmatprep.mubr.f32.mxu1 %v6324_v0 }
 0x17f   : > { %4452 = vmatprep.subr.msk.bf16.mxu1 %vm7094_vm4, %v6987_v53  ;;  %4055 = vmatmul.mubr.f32.gmra.mrb[6].mxu0 %v6329_v61 }
 0x180   : > { %4646 = vmatpush3.bf16.msk.msra.mxu0 %vm7096_vm5, %v6987_v53  ;;  %4089 = vmatprep.mubr.f32.mxu0 %v5945_v19 }
 0x181   : > { %3827 = vmatmul.mubr.f32.gmra.mrb[6].mxu1 %v6329_v61  ;;  %4648 = vmatprep.subr.msk.bf16.mxu0 %vm7104_vm14, %v6987_v53 }
 0x182   : > { %4454 = vmatpush3.bf16.msk.msra.mxu1 %vm7094_vm4, %v6987_v53  ;;  %3861 = vmatprep.mubr.f32.mxu1 %v5945_v19 }
 0x183   : > { %4456 = vmatprep.subr.msk.bf16.mxu1 %vm7102_vm8, %v6987_v53 }
 0x184   : > { %4650 = vmatpush3.bf16.msk.msra.mxu0 %vm7104_vm14, %v6987_v53 }
 0x185   : > { %4652 = vmatprep.subr.msk.bf16.mxu0 %vm7112_vm7, %v6987_v53 }
 0x186   : > { %4458 = vmatpush3.bf16.msk.msra.mxu1 %vm7102_vm8, %v6987_v53 }
 0x187   : > { %4460 = vmatprep.subr.msk.bf16.mxu1 %vm7110_vm3, %v6987_v53 }
 0x188   : > { %4654 = vmatpush3.bf16.msk.msra.mxu0 %vm7112_vm7, %v6987_v53 }
 0x189   : > { %4656 = vmatprep.subr.msk.bf16.mxu0 %vm7121_vm10, %v6987_v53 }
 0x18a   : > { %4462 = vmatpush3.bf16.msk.msra.mxu1 %vm7110_vm3, %v6987_v53 }
 0x18b   : > { %4464 = vmatprep.subr.msk.bf16.mxu1 %vm7119_vm9, %v6987_v53 }
 0x18c   : > { %4658 = vmatpush3.bf16.msk.msra.mxu0 %vm7121_vm10, %v6987_v53 }
 0x18d   : > { %4660 = vmatprep.subr.msk.bf16.mxu0 %vm7131_vm13, %v6987_v53 }
 0x18e   : > { %4466 = vmatpush3.bf16.msk.msra.mxu1 %vm7119_vm9, %v6987_v53 }
 0x18f   : > { %4468 = vmatprep.subr.msk.bf16.mxu1 %vm7129_vm11, %v6987_v53 }
 0x190   : > { %4662 = vmatpush3.bf16.msk.msra.mxu0 %vm7131_vm13, %v6987_v53 }
 0x191   : > { %4664 = vmatprep.subr.msk.bf16.mxu0 %vm7141_vm12, %v6987_v53 }
 0x192   : > { %4470 = vmatpush3.bf16.msk.msra.mxu1 %vm7129_vm11, %v6987_v53 }
 0x193   : > { %4472 = vmatprep.subr.msk.bf16.mxu1 %vm7139_vm6, %v6987_v53 }
 0x194   : > { %4666 = vmatpush3.bf16.msk.msra.mxu0 %vm7141_vm12, %v6987_v53 }
 0x195   : > { %4668 = vmatprep.subr.msk.bf16.mxu0 %vm5860_vm15, %v6987_v53 }
 0x196   : > { %4474 = vmatpush3.bf16.msk.msra.mxu1 %vm7139_vm6, %v6987_v53 }
 0x197   : > { %4476 = vmatprep.subr.msk.bf16.mxu1 %vm5844_vm2, %v6987_v53 }
 0x198   : > { %4670 = vmatpush3.bf16.msk.msra.mxu0 %vm5860_vm15, %v6987_v53 }
 0x19a   : > { %4478 = vmatpush3.bf16.msk.msra.mxu1 %vm5844_vm2, %v6987_v53 }
 0x19b   : > { %4090 = vmatmul.mubr.f32.vlgmr.msra.gmra.mrb[4].mxu0 %v6298_v22 }
 0x19c   : > { %4092 = vmatprep.mubr.f32.mxu0 %v6324_v0 }
 0x19d   : > { %3862 = vmatmul.mubr.f32.vlgmr.msra.gmra.mrb[4].mxu1 %v6298_v22 }
 0x19e   : > { %3864 = vmatprep.mubr.f32.mxu1 %v6324_v0 }
 0x19f   : > { %4093 = vmatmul.mubr.f32.gmra.mrb[6].mxu0 %v6329_v61 }
 0x1a1   : > { %3865 = vmatmul.mubr.f32.gmra.mrb[6].mxu1 %v6329_v61 }
 0x1ab   : > { %v3521_v37 = vpop.f32.mrb[0].mxu1  ;;  %v3635_v36 = vpop.f32.mrb[0].mxu0 }
 0x1ac   : > { %v4671_v19 = vadd.f32 %v3635_v36, %v3521_v37  ;;  %v683_v18 = vpop.f32.mrb[1].mxu1  ;;  %v1041_v6 = vpop.f32.mrb[1].mxu0 }
 0x1ad   : > { %v4672_v33 = vadd.f32 %v1041_v6, %v683_v18 }
 0x1b1   : > { %v3524_v4 = vpop.f32.mrb[2].mxu1  ;;  %v3638_v53 = vpop.f32.mrb[2].mxu0 }
 0x1b2   : > { %v4673_v42 = vadd.f32 %v3638_v53, %v3524_v4  ;;  %v697_v29 = vpop.f32.mrb[3].mxu1  ;;  %v1053_v16 = vpop.f32.mrb[3].mxu0 }
 0x1b3   : > { %v4674_v39 = vadd.f32 %v1053_v16, %v697_v29 }
 0x26e   : > { %v4091_v31 = vpop.f32.mrb[4].mxu0 }
 0x26f   : > { %v2724_v48 = vmul.f32 %v4671_v19, %v4091_v31  ;;  %v2687_v21 = vpop.f32.mrb[5].mxu0 }
 0x270   : > { %v3863_v54 = vpop.f32.mrb[4].mxu1  ;;  %v2723_v9 = vmul.f32 %v4672_v33, %v2687_v21 }
 0x271   : > { %v2710_v34 = vmul.f32 %v4671_v19, %v3863_v54  ;;  %v1864_v58 = vpop.f32.mrb[5].mxu1 }
 0x272   : > { %v2709_v20 = vmul.f32 %v4672_v33, %v1864_v58  ;;  %v2727_v22 = vadd.f32 %v2724_v48, %v2723_v9  ;;  %v4094_v47 = vpop.f32.mrb[6].mxu0 }
 0x273   : > { %v2726_v26 = vmul.f32 %v4673_v42, %v4094_v47  ;;  %v2699_v7 = vpop.f32.mrb[7].mxu0 }
 0x274   : > { %v2713_v0 = vadd.f32 %v2710_v34, %v2709_v20  ;;  %v3866_v28 = vpop.f32.mrb[6].mxu1  ;;  %v2725_v14 = vmul.f32 %v4674_v39, %v2699_v7 }
 0x275   : > { %v2712_v27 = vmul.f32 %v4673_v42, %v3866_v28  ;;  %v1876_v61 = vpop.f32.mrb[7].mxu1 }
 0x276   : > { %v2711_v50 = vmul.f32 %v4674_v39, %v1876_v61  ;;  %v2728_v44 = vadd.f32 %v2727_v22, %v2725_v14 }
 0x278   : > { %v2714_v60 = vadd.f32 %v2713_v0, %v2711_v50  ;;  %v2729_v8 = vadd.f32 %v2728_v44, %v2726_v26 }
 0x27a   : > { %v2715_v23 = vadd.f32 %v2714_v60, %v2712_v27  ;;  %v2730_v59 = vrot.slane %v2729_v8, 4 }
 0x27c   : > { %v2716_v49 = vrot.slane %v2715_v23, 4  ;;  %v2731_v51 = vadd.f32 %v2730_v59, %v2729_v8 }
 0x27e   : > { %v2717_v32 = vadd.f32 %v2716_v49, %v2715_v23  ;;  %v2732_v25 = vrot.slane %v2731_v51, 2 }
 0x280   : > { %v2718_v35 = vrot.slane %v2717_v32, 2  ;;  %v2733_v5 = vadd.f32 %v2732_v25, %v2731_v51 }
 0x282   : > { %v2719_v11 = vadd.f32 %v2718_v35, %v2717_v32  ;;  %v2734_v15 = vrot.slane %v2733_v5, 1 }
 0x284   : > { %v2720_v1 = vrot.slane %v2719_v11, 1  ;;  %v2735_v30 = vadd.f32 %v2734_v15, %v2733_v5 }
 0x286   : > { %v2721_v43 = vadd.f32 %v2720_v1, %v2719_v11  ;;  %2736 = vst [vmem:[%s214_s17 + $0x1] sm:$0x1] %v2735_v30 }
 0x288   : > { %2722 = vst [vmem:[%s214_s17] sm:$0x1] %v2721_v43 }
 0x289   : > { %4901 = shalt.err (!%p4898_p2)
}
 0x28a   : > { %s4902_s11 = scalar_lea.hbm %s6763_s29, 32  ;;  %s4906_s8 = scalar_lea.hbm %s6810_s3, 64 }
 0x28b   : > { %p4903_p13 = scmp.ne.s32.totalorder %s6763_s29, %s4902_s11  ;;  %p4907_p4 = scmp.lt.u32.totalorder %s6763_s29, %s6810_s3 }
 0x28c   : > { %p4908_p5 = scmp.lt.u32.totalorder %s4906_s8, %s4902_s11  ;;  %p4910_p11 = scmp.lt.u32.totalorder %s4902_s11, %s6763_s29 }
 0x28d   : > { %p4904_p6 = pnand %p4903_p13, %p7173_p0 }
 0x28e   : > { %p4909_p8 = por %p4908_p5, %p4907_p4 }
 0x28f   : > { %p4905_p10 = pneg %p4904_p6 }
 0x290   : > { %p4911_p1 = por %p4910_p11, %p4909_p8 }
 0x292   : > { %p4912_p3 = pnand %p4911_p1, %p4905_p10 }
 0x294   : > { %4915 = shalt.err (!%p4912_p3)
}
 0x295   : > { %4741 = dma.vmem_to_hbm [thread:$0]  (%p7173_p0), %s6765_s24, 32, %s6763_s29, %s2738_s30  }
 0x296 PF: > { %s2763_s22 = sand.u32 1, %s4946_s12   ;;  %p7174_p7 = scmp.ne.s32.totalorder %s6947_s19, 0 }
 0x297   : > { %p7175_p9 = scmp.ge.s32.totalorder %s4958_s15, 2  ;;  %s2764_s18 = scalar_lea.sflag [#allocation4], %s2763_s22 }
 0x299   : > { %p4755_p12 = pnand %p7175_p9, %p7174_p7 }
 0x29b   : > { %4941 = dma.done.wait (!%p4755_p12), %s2764_s18, 32  }
 0x29c   : > { %4943 = vsyncadd (!%p4755_p12), %s2764_s18, 4294967264  ;;  %p17_p2 = scmp.ge.s32.totalorder %s5098_s4, 4   ;;  %s7176_s12 = smov %s4950_s13 }
 0x29d   : > { %s7177_s13 = smov %s4954_s14  ;;  %s7178_s14 = smov %s5114_s9 }
 0x29e   : > { %s7179_s15 = smov %s5098_s4  ;;  %19 = sbr.rel (!%p17_p2) target bundleno = 6 (0x6), region = 85 }
 0x2a5   :  { %2769 = vsyncpa [#allocation3], 1 }
 0x2a6   :  { %2771 = vsyncpa [#allocation3 + $0x1], 1 }
 0x2a7   :  { %2772 = vsyncpa [#allocation6], 1 }
 0x2a8   :  { %2773 = vsyncpa [#allocation4], 1 }
 0x2a9   :  { %2775 = vsyncpa [#allocation4 + $0x1], 1 }

</bundles_post_ra>
